<compile_context>
chip_gen: v5e
topology: v5e:2x2
jax: 0.10.0
libtpu: 0.0.40
codegen_flags: <defaults>
</compile_context>

<pallas_src>
import functools

import jax
import jax.numpy as jnp
from jax.experimental import pallas as pl
from jax.experimental.pallas import tpu as pltpu

TM, TN, TK = 512, 512, 512


def _tile(dim, preferred, align):
    """Largest multiple of `align` <= preferred that divides dim; if dim <= preferred
    (or nothing divides) return the full dim (block extent == array extent is legal)."""
    if dim <= preferred:
        return dim
    t = (preferred // align) * align
    while t >= align:
        if dim % t == 0:
            return t
        t -= align
    return dim


@functools.lru_cache(maxsize=None)
def _vmem_limit_bytes():
    # Leave headroom below physical per-core VMEM (64 MiB on v7x, 128 MiB v5e/v6e).
    try:
        cap = pltpu.get_tpu_info().vmem_capacity_bytes
    except Exception:
        cap = 64 * 1024 * 1024
    return min(int(cap * 0.8), 100 * 1024 * 1024)


def _compiler_params(dims):
    return pltpu.CompilerParams(
        dimension_semantics=dims,
        vmem_limit_bytes=_vmem_limit_bytes(),
    )


# ------------------------- one-time weight preparation ------------------------
def prepare_qwen3_mlp_weights(w_gate_up, w_down):
    """Call ONCE at model load time (not per forward).

    w_gate_up: (hidden, 2*inter) = gate_up_proj.weight.T, gate columns first.
    w_down:    (inter, hidden)   = down_proj.weight.T.

    Returns bf16 weights; gate/up columns of w_gate_up are interleaved per
    tn-wide output tile so the kernel fetches one (tk, 2*tn) block per step.
    """
    K, two_i = w_gate_up.shape
    inter = two_i // 2
    tn = _tile(inter, TN, 128)
    wg = w_gate_up[:, :inter].reshape(K, inter // tn, 1, tn)
    wu = w_gate_up[:, inter:].reshape(K, inter // tn, 1, tn)
    wgu = jnp.concatenate([wg, wu], axis=2).reshape(K, 2 * inter)
    return wgu.astype(jnp.bfloat16), w_down.astype(jnp.bfloat16)


# --------------------- gate_up matmul fused with SiLU * up --------------------
def _gate_up_silu_kernel(x_ref, wgu_ref, o_ref, g_acc, u_acc, *, tn):
    k = pl.program_id(2)

    @pl.when(k == 0)
    def _():
        g_acc[...] = jnp.zeros_like(g_acc)
        u_acc[...] = jnp.zeros_like(u_acc)

    x = x_ref[...]
    wgu = wgu_ref[...]                                   # (tk, 2*tn): [gate | up]
    g_acc[...] += jnp.dot(x, wgu[:, :tn], preferred_element_type=jnp.float32)
    u_acc[...] += jnp.dot(x, wgu[:, tn:], preferred_element_type=jnp.float32)

    @pl.when(k == pl.num_programs(2) - 1)
    def _():
        g = g_acc[...]
        o_ref[...] = (g * jax.nn.sigmoid(g) * u_acc[...]).astype(o_ref.dtype)


def _gate_up_silu(x, wgu, intermediate):
    T, K = x.shape
    tm = _tile(T, TM, 16)
    tn = _tile(intermediate, TN, 128)
    tk = _tile(K, TK, 128)
    return pl.pallas_call(
        functools.partial(_gate_up_silu_kernel, tn=tn),
        grid=(T // tm, intermediate // tn, K // tk),
        in_specs=[
            pl.BlockSpec((tm, tk), lambda i, j, k: (i, k)),
            pl.BlockSpec((tk, 2 * tn), lambda i, j, k: (k, j)),   # gate+up, one DMA
        ],
        out_specs=pl.BlockSpec((tm, tn), lambda i, j, k: (i, j)),
        out_shape=jax.ShapeDtypeStruct((T, intermediate), jnp.bfloat16),
        scratch_shapes=[pltpu.VMEM((tm, tn), jnp.float32)] * 2,
        compiler_params=_compiler_params(("parallel", "parallel", "arbitrary")),
    )(x, wgu)


# -------------------------------- tiled matmul --------------------------------
def _matmul_kernel(x_ref, w_ref, o_ref, acc_ref):
    @pl.when(pl.program_id(2) == 0)
    def _():
        acc_ref[...] = jnp.zeros_like(acc_ref)

    acc_ref[...] += jnp.dot(x_ref[...], w_ref[...],
                            preferred_element_type=jnp.float32)

    @pl.when(pl.program_id(2) == pl.num_programs(2) - 1)
    def _():
        o_ref[...] = acc_ref[...].astype(o_ref.dtype)


def _linear(x, w, out_dtype):
    T, K = x.shape
    _, N = w.shape
    tm = _tile(T, TM, 16)
    tn = _tile(N, TN, 128)
    tk = _tile(K, TK, 128)
    return pl.pallas_call(
        _matmul_kernel,
        grid=(T // tm, N // tn, K // tk),
        in_specs=[
            pl.BlockSpec((tm, tk), lambda i, j, k: (i, k)),
            pl.BlockSpec((tk, tn), lambda i, j, k: (k, j)),
        ],
        out_specs=pl.BlockSpec((tm, tn), lambda i, j, k: (i, j)),
        out_shape=jax.ShapeDtypeStruct((T, N), out_dtype),
        scratch_shapes=[pltpu.VMEM((tm, tn), jnp.float32)],
        compiler_params=_compiler_params(("parallel", "parallel", "arbitrary")),
    )(x, w)


# ------------------ fused prefill kernel: gate_up + SiLU + down ----------------
def _fused_mlp_kernel(x_ref, wgu_ref, wd_ref, o_ref, g_acc, u_acc, out_acc, *, tn):
    j = pl.program_id(1)
    k = pl.program_id(2)
    nj = pl.num_programs(1)
    nk = pl.num_programs(2)

    @pl.when(jnp.logical_and(j == 0, k == 0))
    def _():
        out_acc[...] = jnp.zeros_like(out_acc)

    @pl.when(k == 0)
    def _():
        g_acc[...] = jnp.zeros_like(g_acc)
        u_acc[...] = jnp.zeros_like(u_acc)

    x = x_ref[...]
    wgu = wgu_ref[...]
    g_acc[...] += jnp.dot(x, wgu[:, :tn], preferred_element_type=jnp.float32)
    u_acc[...] += jnp.dot(x, wgu[:, tn:], preferred_element_type=jnp.float32)

    @pl.when(k == nk - 1)
    def _():
        g = g_acc[...]
        act = (g * jax.nn.sigmoid(g) * u_acc[...]).astype(jnp.bfloat16)
        # Consume the activation tile immediately: partial down_proj accumulation.
        out_acc[...] += jnp.dot(act, wd_ref[...], preferred_element_type=jnp.float32)

    @pl.when(jnp.logical_and(k == nk - 1, j == nj - 1))
    def _():
        o_ref[...] = out_acc[...].astype(o_ref.dtype)


def _mlp_fused(x, wgu, w_down, out_dtype):
    T, K = x.shape
    inter, H = w_down.shape
    tm = TM                                   # T already padded to a multiple of TM
    tn = _tile(inter, TN, 128)
    tk = _tile(K, TK, 128)
    return pl.pallas_call(
        functools.partial(_fused_mlp_kernel, tn=tn),
        grid=(T // tm, inter // tn, K // tk),
        in_specs=[
            pl.BlockSpec((tm, tk), lambda i, j, k: (i, k)),
            pl.BlockSpec((tk, 2 * tn), lambda i, j, k: (k, j)),
            pl.BlockSpec((tn, H), lambda i, j, k: (j, 0)),
        ],
        out_specs=pl.BlockSpec((tm, H), lambda i, j, k: (i, 0)),
        out_shape=jax.ShapeDtypeStruct((T, H), out_dtype),
        scratch_shapes=[
            pltpu.VMEM((tm, tn), jnp.float32),
            pltpu.VMEM((tm, tn), jnp.float32),
            pltpu.VMEM((tm, H), jnp.float32),
        ],
        compiler_params=_compiler_params(("parallel", "arbitrary", "arbitrary")),
    )(x, wgu, w_down)


# ----------------------------------- Qwen3MLP ----------------------------------
def qwen3_mlp(x, w_gate_up_prepped, w_down_prepped):
    """Forward of Qwen3MLP.

    x:                  (..., hidden), any float dtype.
    w_gate_up_prepped:  (hidden, 2*inter) bf16 interleaved (from prepare_*).
    w_down_prepped:     (inter, hidden) bf16 (from prepare_*).
    """
    orig_shape = x.shape
    K = orig_shape[-1]
    out_dtype = x.dtype
    inter, H = w_down_prepped.shape

    xb = x.reshape(-1, K).astype(jnp.bfloat16)
    T = xb.shape[0]

    if T > TM:
        # Prefill: fuse down_proj; row axis is megacore-parallel.
        pad = (-T) % TM
        if pad:
            xb = jnp.pad(xb, ((0, pad), (0, 0)))
        out = _mlp_fused(xb, w_gate_up_prepped, w_down_prepped, out_dtype)
        if pad:
            out = out[:T]
    else:
        # Decode / small batch: two kernels so the intermediate/hidden axes stay
        # "parallel" (megacore split on v7x even with a single row block).
        act = _gate_up_silu(xb, w_gate_up_prepped, inter)
        out = _linear(act, w_down_prepped, out_dtype)

    return out.reshape(*orig_shape[:-1], H)


if __name__ == "__main__":
    key = jax.random.PRNGKey(0)
    k1, k2, k3 = jax.random.split(key, 3)

    hidden, inter = 1024, 1024
    w_gate_up = jax.random.normal(k2, (hidden, 2 * inter), dtype=jnp.float32) / (hidden ** 0.5)
    w_down = jax.random.normal(k3, (inter, hidden), dtype=jnp.float32) / (inter ** 0.5)

    # One-time weight prep (bf16 at rest + interleaved gate/up) — NOT in the hot path.
    wgu_p, wd_p = prepare_qwen3_mlp_weights(w_gate_up, w_down)

    def reference(x):
        xr = x.astype(jnp.bfloat16).astype(jnp.float32)
        wgr = w_gate_up.astype(jnp.bfloat16).astype(jnp.float32)
        wdr = w_down.astype(jnp.bfloat16).astype(jnp.float32)
        g = xr @ wgr[:, :inter]
        u = xr @ wgr[:, inter:]
        act = (g * jax.nn.sigmoid(g) * u).astype(jnp.bfloat16).astype(jnp.float32)
        return act @ wdr

    # Exercise both paths: decode (T <= TM, two kernels) and prefill (fused kernel).
    for name, T in (("decode", 8), ("prefill", 2 * TM)):
        x = jax.random.normal(k1, (T, hidden), dtype=jnp.float32)
        out = jax.block_until_ready(qwen3_mlp(x, wgu_p, wd_p))
        ref = reference(x)
        assert out.shape == (T, hidden), name
        assert bool(jnp.all(jnp.isfinite(out))), name
        assert bool(jnp.allclose(out, ref, rtol=3e-2, atol=3e-2)), name

    print("KERNEL_OK")
</pallas_src>

<mosaic_0001>
module attributes {stable_mosaic.version = 11 : i64} {
  func.func @_gate_up_silu_kernel(%arg0: i32, %arg1: i32, %arg2: i32, %arg3: memref<8x512xbf16, #tpu.memory_space<vmem>>, %arg4: memref<512x1024xbf16, #tpu.memory_space<vmem>>, %arg5: memref<8x512xbf16, #tpu.memory_space<vmem>>, %arg6: memref<8x512xf32, #tpu.memory_space<vmem>>, %arg7: memref<8x512xf32, #tpu.memory_space<vmem>>) attributes {dimension_semantics = [#tpu.dimension_semantics<parallel>, #tpu.dimension_semantics<parallel>, #tpu.dimension_semantics<arbitrary>], iteration_bounds = array<i64: 1, 2, 2>, scalar_prefetch = 0 : i64, scratch_operands = 2 : i64, tpu.core_type = #tpu.core_type<tc>, window_params = [{transform_indices = @transform_0, window_bounds = array<i64: 8, 512>}, {transform_indices = @transform_1, window_bounds = array<i64: 512, 1024>}, {transform_indices = @transform_2, window_bounds = array<i64: 8, 512>}]} {
    %c0_i32 = arith.constant 0 : i32
    %0 = arith.cmpi eq, %arg2, %c0_i32 : i32
    %1 = arith.extui %0 : i1 to i32
    %c0_i32_0 = arith.constant 0 : i32
    %2 = arith.cmpi ne, %1, %c0_i32_0 : i32
    scf.if %2 {
      %cst_14 = arith.constant 0.000000e+00 : f32
      %18 = vector.broadcast %cst_14 : f32 to vector<8x512xf32>
      %c0_15 = arith.constant 0 : index
      %c0_16 = arith.constant 0 : index
      %19 = vector.load %arg6[%c0_15, %c0_16] : memref<8x512xf32, #tpu.memory_space<vmem>>, vector<8x512xf32>
      tpu.vector_store %arg6[%c0_15, %c0_16], %18 {strides = array<i32>} : memref<8x512xf32, #tpu.memory_space<vmem>>, vector<8x512xf32>,
      %cst_17 = arith.constant 0.000000e+00 : f32
      %20 = vector.broadcast %cst_17 : f32 to vector<8x512xf32>
      %c0_18 = arith.constant 0 : index
      %c0_19 = arith.constant 0 : index
      %21 = vector.load %arg7[%c0_18, %c0_19] : memref<8x512xf32, #tpu.memory_space<vmem>>, vector<8x512xf32>
      tpu.vector_store %arg7[%c0_18, %c0_19], %20 {strides = array<i32>} : memref<8x512xf32, #tpu.memory_space<vmem>>, vector<8x512xf32>,
    } else {
    }
    %c0 = arith.constant 0 : index
    %c0_1 = arith.constant 0 : index
    %3 = vector.load %arg3[%c0, %c0_1] : memref<8x512xbf16, #tpu.memory_space<vmem>>, vector<8x512xbf16>
    %c0_2 = arith.constant 0 : index
    %c0_3 = arith.constant 0 : index
    %4 = vector.load %arg4[%c0_2, %c0_3] : memref<512x1024xbf16, #tpu.memory_space<vmem>>, vector<512x1024xbf16>
    %c0_4 = arith.constant 0 : index
    %c0_5 = arith.constant 0 : index
    %5 = vector.load %arg6[%c0_4, %c0_5] : memref<8x512xf32, #tpu.memory_space<vmem>>, vector<8x512xf32>
    %6 = vector.extract_strided_slice %4 {offsets = [0, 0], sizes = [512, 512], strides = [1, 1]} : vector<512x1024xbf16> to vector<512x512xbf16>
    %cst = arith.constant dense<0.000000e+00> : vector<8x512xf32>
    %7 = tpu.matmul %3, %6, %cst {dimension_numbers = #tpu.dot_dimension_numbers<[1], [0], [0], [1], [0, 0, 1, 1], [], []>} : vector<8x512xbf16>, vector<512x512xbf16>, vector<8x512xf32> -> vector<8x512xf32>
    %8 = arith.addf %5, %7 : vector<8x512xf32>
    %c0_6 = arith.constant 0 : index
    %c0_7 = arith.constant 0 : index
    %9 = vector.load %arg6[%c0_6, %c0_7] : memref<8x512xf32, #tpu.memory_space<vmem>>, vector<8x512xf32>
    tpu.vector_store %arg6[%c0_6, %c0_7], %8 {strides = array<i32>} : memref<8x512xf32, #tpu.memory_space<vmem>>, vector<8x512xf32>,
    %c0_8 = arith.constant 0 : index
    %c0_9 = arith.constant 0 : index
    %10 = vector.load %arg7[%c0_8, %c0_9] : memref<8x512xf32, #tpu.memory_space<vmem>>, vector<8x512xf32>
    %11 = vector.extract_strided_slice %4 {offsets = [0, 512], sizes = [512, 512], strides = [1, 1]} : vector<512x1024xbf16> to vector<512x512xbf16>
    %cst_10 = arith.constant dense<0.000000e+00> : vector<8x512xf32>
    %12 = tpu.matmul %3, %11, %cst_10 {dimension_numbers = #tpu.dot_dimension_numbers<[1], [0], [0], [1], [0, 0, 1, 1], [], []>} : vector<8x512xbf16>, vector<512x512xbf16>, vector<8x512xf32> -> vector<8x512xf32>
    %13 = arith.addf %10, %12 : vector<8x512xf32>
    %c0_11 = arith.constant 0 : index
    %c0_12 = arith.constant 0 : index
    %14 = vector.load %arg7[%c0_11, %c0_12] : memref<8x512xf32, #tpu.memory_space<vmem>>, vector<8x512xf32>
    tpu.vector_store %arg7[%c0_11, %c0_12], %13 {strides = array<i32>} : memref<8x512xf32, #tpu.memory_space<vmem>>, vector<8x512xf32>,
    %c1_i32 = arith.constant 1 : i32
    %15 = arith.cmpi eq, %arg2, %c1_i32 : i32
    %16 = arith.extui %15 : i1 to i32
    %c0_i32_13 = arith.constant 0 : i32
    %17 = arith.cmpi ne, %16, %c0_i32_13 : i32
    scf.if %17 {
      %c0_14 = arith.constant 0 : index
      %c0_15 = arith.constant 0 : index
      %18 = vector.load %arg6[%c0_14, %c0_15] : memref<8x512xf32, #tpu.memory_space<vmem>>, vector<8x512xf32>
      %19 = arith.negf %18 : vector<8x512xf32>
      %20 = math.exp %19 : vector<8x512xf32>
      %cst_16 = arith.constant 1.000000e+00 : f32
      %21 = vector.broadcast %cst_16 : f32 to vector<8x512xf32>
      %22 = arith.addf %21, %20 : vector<8x512xf32>
      %23 = arith.divf %21, %22 : vector<8x512xf32>
      %24 = arith.mulf %18, %23 : vector<8x512xf32>
      %c0_17 = arith.constant 0 : index
      %c0_18 = arith.constant 0 : index
      %25 = vector.load %arg7[%c0_17, %c0_18] : memref<8x512xf32, #tpu.memory_space<vmem>>, vector<8x512xf32>
      %26 = arith.mulf %24, %25 : vector<8x512xf32>
      %27 = arith.truncf %26 : vector<8x512xf32> to vector<8x512xbf16>
      %c0_19 = arith.constant 0 : index
      %c0_20 = arith.constant 0 : index
      %28 = vector.load %arg5[%c0_19, %c0_20] : memref<8x512xbf16, #tpu.memory_space<vmem>>, vector<8x512xbf16>
      tpu.vector_store %arg5[%c0_19, %c0_20], %27 {strides = array<i32>} : memref<8x512xbf16, #tpu.memory_space<vmem>>, vector<8x512xbf16>,
    } else {
    }
    return
  }
  func.func @transform_0(%arg0: i32, %arg1: i32, %arg2: i32) -> (i32, i32) {
    %c0_i32 = arith.constant 0 : i32
    return %arg0, %arg2 : i32, i32
  }
  func.func @transform_1(%arg0: i32, %arg1: i32, %arg2: i32) -> (i32, i32) {
    %c0_i32 = arith.constant 0 : i32
    return %arg2, %arg1 : i32, i32
  }
  func.func @transform_2(%arg0: i32, %arg1: i32, %arg2: i32) -> (i32, i32) {
    %c0_i32 = arith.constant 0 : i32
    return %arg0, %arg1 : i32, i32
  }
}

</mosaic_0001>

<bundles_post_ra>
// kernel: tpu_custom_call.1
= control target key start
LH: loop header
LB: loop body
LE: loop exit
PB: predicated region body
PF: predicated region fallthrough
CT: control target
= control target key end

     0   :  { %s5056_s0 = inlined_call_operand.hbm [shape: bf16[8,1024], index: 0, kind: input, shape index: {}]   ;;  %s5057_s1 = inlined_call_operand.hbm [shape: bf16[1024,2048], index: 1, kind: input, shape index: {}]   ;;  %s5058_s2 = inlined_call_operand.hbm [shape: bf16[8,1024], index: 2, kind: output, shape index: {}]  }
   0x1   :  { %5066 = sst [smem:[#allocation23_spill]] %s5056_s0 }
   0x2   :  { %7 = vsyncpa [#allocation5], 0 }
   0x3   :  { %9 = vsyncpa [#allocation5 + $0x1], 0 }
   0x4   :  { %10 = vsyncpa [#allocation8], 0 }
   0x5   :  { %12 = vsyncpa [#allocation8 + $0x1], 0 }
   0x6   :  { %13 = vsyncpa [#allocation6], 0 }
   0x7   :  { %15 = vsyncpa [#allocation6 + $0x1], 0  ;;  %s4169_s9 = smov 0   ;;  %s4171_s10 = smov 0  }
   0x8   :  { %s4173_s11 = smov 0   ;;  %s4175_s12 = smov 0  }
   0x9   :  { %s4177_s13 = smov 0   ;;  %s4179_s14 = smov 0  }
   0xa   :  { %s4181_s15 = smov 0   ;;  %s4183_s16 = smov 0  }
   0xb   :  { %s4185_s17 = smov 0   ;;  %s4187_s18 = smov 0  }
   0xc   :  { %s4189_s19 = smov 0   ;;  %s4191_s20 = smov 0  }
   0xd   :  { %s4193_s21 = smov 0   ;;  %s4195_s22 = smov 0  }
   0xe LB: > { %5067 = sst [smem:[#allocation13_spill]] %s4096_s9  ;;  %s2477_s23 = sadd.s32 4294967295, %s4148_s22   ;;  %s4148_s22 = sphi %s4195_s22, %s21_s22   ;;  %s4144_s21 = sphi %s4193_s21, %s5118_s21   ;;  %s4140_s20 = sphi %s4191_s20, %s5108_s20   ;;  %s4136_s19 = sphi %s4189_s19, %s5117_s19   ;;  %s4132_s18 = sphi %s4187_s18, %s5107_s18   ;;  %s4128_s17 = sphi %s4185_s17, %s5106_s17   ;;  %s4124_s16 = sphi %s4183_s16, %s5116_s16   ;;  %s4120_s15 = sphi %s4181_s15, %s5115_s15   ;;  %s4116_s14 = sphi %s4179_s14, %s5114_s14   ;;  %s4112_s13 = sphi %s4177_s13, %s5113_s13   ;;  %s4108_s12 = sphi %s4175_s12, %s5112_s12   ;;  %s4104_s11 = sphi %s4173_s11, %s5103_s11   ;;  %s4100_s10 = sphi %s4171_s10, %s5111_s10   ;;  %s4096_s9 = sphi %s4169_s9, %s5110_s9  }
   0xf   : > { %5068 = sst [smem:[#allocation14_spill]] %s4104_s11  ;;  %s2478_s24 = sadd.s32 4294967294, %s4148_s22  }
  0x10   : > { %5069 = sst [smem:[#allocation15_spill]] %s4128_s17  ;;  %s33_s25 = sadd.s32 1, %s4140_s20 }
  0x11   : > { %5070 = sst [smem:[#allocation16_spill]] %s4140_s20  ;;  %s36_s26 = sadd.s32 1, %s4144_s21 }
  0x12   : > { %p34_p0 = scmp.ge.s32.totalorder %s33_s25, 2  ;;  %s49_s27 = sadd.s32 1, %s4128_s17 }
  0x13   : > { %p56_p1 = scmp.ne.s32.totalorder %s4128_s17, %s4124_s16  ;;  %p57_p2 = scmp.eq.s32.totalorder %s4148_s22, 0 }
  0x14   : > { %s5120_s25 = smov (%p34_p0, %s33_s25), 0  ;;  %s5122_s26 = smov (!%p34_p0, %s36_s26), %s4144_s21 }
  0x15   : > { %5071 = sst [smem:[#allocation17_spill]] %s5120_s25  ;;  %s45_s28 = ssub.s32 %s4140_s20, %s5120_s25 }
  0x16   : > { %p4252_p3 = por %p57_p2, %p56_p1  ;;  %p38_p4 = scmp.ge.s32.totalorder %s5122_s26, 2 }
  0x17   : > { %p47_p5 = scmp.eq.s32.totalorder %s45_s28, 0  ;;  %p62_p6 = scmp.ne.s32.totalorder %s4124_s16, %s4120_s15 }
  0x18   : > { %p4259_p7 = scmp.eq.s32.totalorder %s2477_s23, 0  ;;  %s5124_s26 = smov (%p38_p4, %s5122_s26), 0 }
  0x19   : > { %5074 = sst [smem:[#allocation18_spill]] %s5124_s26  ;;  %s73_s5 = ssub.s32 %s4144_s21, %s5124_s26 }
  0x1a   : > { %s4266_s3 = scalar_select %p47_p5, %s4128_s17, %s49_s27  }
  0x1b   : > { %p4270_p8 = por %p4259_p7, %p62_p6  ;;  %s74_s6 = sor.u32 %s73_s5, %s45_s28 }
  0x1c   : > { %5075 = sst [smem:[#allocation19_spill]] %s4266_s3  ;;  %s77_s7 = sadd.s32 1, %s4116_s14 }
  0x1d   : > { %p75_p9 = scmp.eq.s32.totalorder %s74_s6, 0  ;;  %p84_p10 = scmp.ne.s32.totalorder %s4116_s14, %s4112_s13 }
  0x1e   : > { %p90_p11 = scmp.ne.s32.totalorder %s4112_s13, %s4108_s12  ;;  %p103_p12 = scmp.eq.s32.totalorder %s73_s5, 0 }
  0x1f   : > { %s4282_s8 = scalar_select %p75_p9, %s4116_s14, %s77_s7  }
  0x20   : > { %p4286_p13 = por %p84_p10, %p57_p2  ;;  %p4292_p0 = por %p90_p11, %p4259_p7 }
  0x21   : > { %5077 = sst [smem:[#allocation20_spill]] %s4282_s8  ;;  %s105_s28 = sadd.s32 1, %s4104_s11 }
  0x22   : > { %p115_p1 = scmp.ne.s32.totalorder %s4104_s11, %s4100_s10  ;;  %p116_p4 = scmp.eq.s32.totalorder %s2477_s23, 3 }
  0x23   : > { %s4300_s6 = scalar_select %p103_p12, %s4104_s11, %s105_s28  }
  0x24   : > { %p121_p5 = scmp.ne.s32.totalorder %s4100_s10, %s4096_s9  ;;  %p122_p2 = scmp.eq.s32.totalorder %s2478_s24, 3 }
  0x25   : > { %5080 = sst [smem:[#allocation21_spill]] %s4300_s6  ;;  %p4308_p6 = por %p116_p4, %p115_p1 }
  0x26   : > { %p3804_p7 = scmp.lt.s32.totalorder %s4148_s22, 4  ;;  %p4313_p9 = por %p122_p2, %p121_p5 }
  0x27   : > { %s142_s5 = sand.u32 1, %s4128_s17   ;;  %s3528_s7 = sshll.u32 %s4140_s20, 4 }
  0x28   : > { %s5082_s30 = scalar_select %p4313_p9, 1, 0 }
  0x29   : > { %s2481_s23 = sshll.u32 %s142_s5, 4  ;;  %s5084_s0 = sld [smem:[#allocation23_spill]] }
  0x2a   : > { %5083 = sst [smem:[#allocation22_spill]] %s5082_s30  ;;  %s146_s25 = scalar_lea.vmem [#allocation4], %s2481_s23 }
  0x2b   : > { %s157_s3 = sshll.u32 %s146_s25, 4  ;;  %p3794_p10 = pnand %p3804_p7, %p4252_p3  ;;  %s158_s3 = int_to_ptr.vmem [resolvable:$true] %s157_s3 }
  0x2c   : > { %s3529_s6 = sshll.u32 %s4140_s20, 10  ;;  %p4331_p11 = pnand %p3804_p7, %p4286_p13 }
  0x2d   : > { %p2489_p12 = scmp.ge.s32.totalorder %s4148_s22, 1  ;;  %s143_s11 = scalar_lea.sflag [#allocation5], %s142_s5 }
  0x2e   : > { %p187_p1 = scmp.lt.s32.totalorder %s4148_s22, 5  ;;  %s164_s26 = sand.u32 1, %s4116_s14  }
  0x2f   : > { %s153_s24 = scalar_lea.hbm %s5084_s0, %s3528_s7  ;;  %s2486_s25 = sshll.u32 %s4144_s21, 3 }
  0x30   : > { %s155_s8 = sshll.u32 %s153_s24, 4  ;;  %p4339_p4 = pnand %p2489_p12, %p187_p1  ;;  %s156_s8 = int_to_ptr.hbm [resolvable:$true] %s155_s8 }
  0x31   : > { %3796 = dma.hbm_to_vmem [thread:$0]  (!%p3794_p10), %s156_s8, 256, %s158_s3, %s143_s11  }
  0x32   : > { %s2484_s29 = sshll.u32 %s164_s26, 11  ;;  %s174_s7 = sadd.s32 %s3529_s6, %s2486_s25 }
  0x33   : > { %s2488_s28 = sshll.u32 %s174_s7, 2  ;;  %s168_s20 = scalar_lea.vmem [#allocation7], %s2484_s29 }
  0x34   : > { %s176_s0 = scalar_lea.hbm %s5057_s1, %s2488_s28  ;;  %s179_s30 = sshll.u32 %s168_s20, 4  ;;  %s180_s30 = int_to_ptr.vmem [resolvable:$true] %s179_s30 }
  0x35   : > { %s177_s9 = sshll.u32 %s176_s0, 4  ;;  %s165_s11 = scalar_lea.sflag [#allocation8], %s164_s26  ;;  %s178_s9 = int_to_ptr.hbm [resolvable:$true] %s177_s9 }
  0x36   : > { %s4150_s3 = smov 1024   ;;  %s4151_s8 = smov 512  }
  0x37   : > { %s4152_s5 = smov 32   ;;  %191 = sbr.rel (%p4339_p4) target bundleno = 568 (0x238), region = 28 }
  0x38   : > { %3799 = dma.hbm_to_vmem [thread:$0]  (!%p4331_p11), %s178_s9, 32768, %s180_s30, %s165_s11, %s4150_s3, %s4151_s8, %s4152_s5  }
  0x39   : > { %s193_s6 = sand.u32 (!%p4339_p4), 1, %s4124_s16  }
  0x3a   : > { %s4351_s25 = sshll.u32 (!%p4339_p4), %s193_s6, 4  ;;  %s194_s29 = scalar_lea.sflag (!%p4339_p4), [#allocation5], %s193_s6 }
  0x3b   : > { %s197_s20 = scalar_lea.vmem (!%p4339_p4), [#allocation4], %s4351_s25 }
  0x3c   : > { %4083 = dma.done.wait (%p4270_p8), %s194_s29, 256  }
  0x3d   : > { %4085 = vsyncadd (%p4270_p8), %s194_s29, 4294967040  ;;  %s203_s0 = sand.u32 1, %s4112_s13  }
  0x3e   : > { %s2491_s9 = sshll.u32 %s203_s0, 11  ;;  %s204_s17 = scalar_lea.sflag [#allocation8], %s203_s0 }
  0x3f   : > { %s4359_s30 = scalar_lea.vmem [#allocation7], %s2491_s9 }
  0x40   : > { %4087 = dma.done.wait (%p4292_p0), %s204_s17, 32768  }
  0x41   : > { %4089 = vsyncadd (%p4292_p0), %s204_s17, 4294934528  ;;  %s231_s26 = sand.u32 1, %s4100_s10   ;;  %p2493_p3 = scmp.ne.s32.totalorder %s4132_s18, 0 }
  0x42   : > { %s2492_s23 = sshll.u32 %s231_s26, 4 }
  0x43   : > { %s4368_s7 = scalar_lea.vmem [#allocation9], %s2492_s23  ;;  %241 = sbr.rel (%p2493_p3) target bundleno = 81 (0x51), region = 40 }
  0x48   : > { %v4153_v0 = vmov 0.0  }
  0x49   : > { %242 = vst [vmem:[#allocation2 + $0x10] sm:$0xff] %v4153_v0 }
  0x4a   : > { %243 = vst [vmem:[#allocation2] sm:$0xff] %v4153_v0 }
  0x4b   : > { %244 = vst [vmem:[#allocation2 + $0x18] sm:$0xff] %v4153_v0 }
  0x4c   : > { %245 = vst [vmem:[#allocation2 + $0x8] sm:$0xff] %v4153_v0 }
  0x4d   : > { %246 = vst [vmem:[#allocation3] sm:$0xff] %v4153_v0 }
  0x4e   : > { %247 = vst [vmem:[#allocation3 + $0x18] sm:$0xff] %v4153_v0 }
  0x4f   : > { %248 = vst [vmem:[#allocation3 + $0x8] sm:$0xff] %v4153_v0 }
  0x50   : > { %249 = vst [vmem:[#allocation3 + $0x10] sm:$0xff] %v4153_v0 }
  0x51 PF: > { %v2608_v1 = vld [vmem:[%s4359_s30 + $0x1c0] sm:$0xf]  ;;  %p3518_p8 = scmp.ne.s32.totalorder %s4132_s18, 1 }
  0x52   : > { %v3590_v2 = vld [vmem:[%s4359_s30 + $0x1dc] sm:$0xf0] }
  0x53   : > { %v2736_v3 = vld [vmem:[%s4359_s30 + $0x3c0] sm:$0xf]  ;;  %v2609_v4 = vor.u32 %v3590_v2, %v2608_v1 }
  0x54   : > { %v3654_v5 = vld [vmem:[%s4359_s30 + $0x3dc] sm:$0xf0] }
  0x55   : > { %v2864_v6 = vld [vmem:[%s4359_s30 + $0x5c0] sm:$0xf]  ;;  %v2737_v8 = vor.u32 %v3654_v5, %v2736_v3  ;;  %1166 = vmatpush.bf16.msra.mxu0 %v2609_v4 }
  0x56   : > { %v3718_v7 = vld [vmem:[%s4359_s30 + $0x5dc] sm:$0xf0] }
  0x57   : > { %v2865_v9 = vor.u32 %v3718_v7, %v2864_v6  ;;  %v2992_v10 = vld [vmem:[%s4359_s30 + $0x7c0] sm:$0xf]  ;;  %1179 = vmatpush.bf16.msra.mxu1 %v2737_v8 }
  0x58   : > { %v3782_v11 = vld [vmem:[%s4359_s30 + $0x7dc] sm:$0xf0] }
  0x59   : > { %v2592_v12 = vld [vmem:[%s4359_s30 + $0x180] sm:$0xf]  ;;  %v2993_v13 = vor.u32 %v3782_v11, %v2992_v10  ;;  %1192 = vmatpush.bf16.msra.mxu2 %v2865_v9 }
  0x5a   : > { %v3582_v14 = vld [vmem:[%s4359_s30 + $0x19c] sm:$0xf0] }
  0x5b   : > { %v2720_v15 = vld [vmem:[%s4359_s30 + $0x380] sm:$0xf]  ;;  %v2593_v17 = vor.u32 %v3582_v14, %v2592_v12  ;;  %1205 = vmatpush.bf16.msra.mxu3 %v2993_v13 }
  0x5c   : > { %v3646_v16 = vld [vmem:[%s4359_s30 + $0x39c] sm:$0xf0] }
  0x5d   : > { %v2721_v18 = vor.u32 %v3646_v16, %v2720_v15  ;;  %v2848_v19 = vld [vmem:[%s4359_s30 + $0x580] sm:$0xf]  ;;  %1167 = vmatpush.bf16.msra.mxu0 %v2593_v17 }
  0x5e   : > { %v3710_v20 = vld [vmem:[%s4359_s30 + $0x59c] sm:$0xf0] }
  0x5f   : > { %v2976_v21 = vld [vmem:[%s4359_s30 + $0x780] sm:$0xf]  ;;  %v2849_v22 = vor.u32 %v3710_v20, %v2848_v19  ;;  %1180 = vmatpush.bf16.msra.mxu1 %v2721_v18 }
  0x60   : > { %v3774_v23 = vld [vmem:[%s4359_s30 + $0x79c] sm:$0xf0] }
  0x61   : > { %v2576_v24 = vld [vmem:[%s4359_s30 + $0x140] sm:$0xf]  ;;  %v2977_v26 = vor.u32 %v3774_v23, %v2976_v21  ;;  %1193 = vmatpush.bf16.msra.mxu2 %v2849_v22 }
  0x62   : > { %v3574_v25 = vld [vmem:[%s4359_s30 + $0x15c] sm:$0xf0] }
  0x63   : > { %v2704_v27 = vld [vmem:[%s4359_s30 + $0x340] sm:$0xf]  ;;  %v2577_v30 = vor.u32 %v3574_v25, %v2576_v24  ;;  %1206 = vmatpush.bf16.msra.mxu3 %v2977_v26 }
  0x64   : > { %v3638_v28 = vld [vmem:[%s4359_s30 + $0x35c] sm:$0xf0] }
  0x65   : > { %v2832_v29 = vld [vmem:[%s4359_s30 + $0x540] sm:$0xf]  ;;  %v2705_v34 = vor.u32 %v3638_v28, %v2704_v27  ;;  %1168 = vmatpush.bf16.msra.mxu0 %v2577_v30  ;;  %v2610_v30 = vld [vmem:[%s4359_s30 + $0x1e0] sm:$0xf0] }
  0x66   : > { %v3702_v31 = vld [vmem:[%s4359_s30 + $0x55c] sm:$0xf0] }
  0x67   : > { %v2960_v32 = vld [vmem:[%s4359_s30 + $0x740] sm:$0xf]  ;;  %v2833_v35 = vor.u32 %v3702_v31, %v2832_v29  ;;  %1181 = vmatpush.bf16.msra.mxu1 %v2705_v34  ;;  %v3586_v29 = vld [vmem:[%s4359_s30 + $0x1c4] sm:$0xf] }
  0x68   : > { %v3766_v33 = vld [vmem:[%s4359_s30 + $0x75c] sm:$0xf0]  ;;  %v3650_v31 = vld [vmem:[%s4359_s30 + $0x3c4] sm:$0xf] }
  0x69   : > { %v2560_v36 = vld [vmem:[%s4359_s30 + $0x100] sm:$0xf]  ;;  %v2961_v39 = vor.u32 %v3766_v33, %v2960_v32  ;;  %1194 = vmatpush.bf16.msra.mxu2 %v2833_v35  ;;  %v2738_v33 = vld [vmem:[%s4359_s30 + $0x3e0] sm:$0xf0] }
  0x6a   : > { %v3566_v37 = vld [vmem:[%s4359_s30 + $0x11c] sm:$0xf0]  ;;  %v3714_v34 = vld [vmem:[%s4359_s30 + $0x5c4] sm:$0xf] }
  0x6b   : > { %v2688_v38 = vld [vmem:[%s4359_s30 + $0x300] sm:$0xf]  ;;  %v2561_v45 = vor.u32 %v3566_v37, %v2560_v36  ;;  %1207 = vmatpush.bf16.msra.mxu3 %v2961_v39  ;;  %v2866_v35 = vld [vmem:[%s4359_s30 + $0x5e0] sm:$0xf0] }
  0x6c   : > { %v3630_v40 = vld [vmem:[%s4359_s30 + $0x31c] sm:$0xf0]  ;;  %v2994_v39 = vld [vmem:[%s4359_s30 + $0x7e0] sm:$0xf0] }
  0x6d   : > { %v2816_v41 = vld [vmem:[%s4359_s30 + $0x500] sm:$0xf]  ;;  %v2689_v46 = vor.u32 %v3630_v40, %v2688_v38  ;;  %1169 = vmatpush.bf16.msra.mxu0 %v2561_v45  ;;  %v3778_v38 = vld [vmem:[%s4359_s30 + $0x7c4] sm:$0xf] }
  0x6e   : > { %v3694_v42 = vld [vmem:[%s4359_s30 + $0x51c] sm:$0xf0]  ;;  %v2594_v45 = vld [vmem:[%s4359_s30 + $0x1a0] sm:$0xf0] }
  0x6f   : > { %v2944_v43 = vld [vmem:[%s4359_s30 + $0x700] sm:$0xf]  ;;  %v2817_v47 = vor.u32 %v3694_v42, %v2816_v41  ;;  %1182 = vmatpush.bf16.msra.mxu1 %v2689_v46  ;;  %v2613_v41 = vor.u32 %v3586_v29, %v2610_v30  ;;  %v2741_v42 = vor.u32 %v3650_v31, %v2738_v33  ;;  %v3642_v46 = vld [vmem:[%s4359_s30 + $0x384] sm:$0xf] }
  0x70   : > { %v3758_v44 = vld [vmem:[%s4359_s30 + $0x71c] sm:$0xf0]  ;;  %v3682_v29 = vld [vmem:[%s4359_s30 + $0x4c4] sm:$0xf] }
  0x71   : > { %v2544_v48 = vld [vmem:[%s4359_s30 + $0xc0] sm:$0xf]  ;;  %v2945_v51 = vor.u32 %v3758_v44, %v2944_v43  ;;  %1195 = vmatpush.bf16.msra.mxu2 %v2817_v47  ;;  %v2869_v43 = vor.u32 %v3714_v34, %v2866_v35  ;;  %v3578_v44 = vld [vmem:[%s4359_s30 + $0x184] sm:$0xf]  ;;  %v2997_v47 = vor.u32 %v3778_v38, %v2994_v39 }
  0x72   : > { %v3558_v49 = vld [vmem:[%s4359_s30 + $0xdc] sm:$0xf0]  ;;  %v2802_v30 = vld [vmem:[%s4359_s30 + $0x4e0] sm:$0xf0] }
  0x73   : > { %v2672_v50 = vld [vmem:[%s4359_s30 + $0x2c0] sm:$0xf]  ;;  %v2545_v57 = vor.u32 %v3558_v49, %v2544_v48  ;;  %1208 = vmatpush.bf16.msra.mxu3 %v2945_v51  ;;  %v2722_v48 = vld [vmem:[%s4359_s30 + $0x3a0] sm:$0xf0] }
  0x74   : > { %v3622_v52 = vld [vmem:[%s4359_s30 + $0x2dc] sm:$0xf0]  ;;  %v3706_v49 = vld [vmem:[%s4359_s30 + $0x584] sm:$0xf] }
  0x75   : > { %v2800_v53 = vld [vmem:[%s4359_s30 + $0x4c0] sm:$0xf]  ;;  %v2673_v58 = vor.u32 %v3622_v52, %v2672_v50  ;;  %1170 = vmatpush.bf16.msra.mxu0 %v2545_v57  ;;  %v2850_v50 = vld [vmem:[%s4359_s30 + $0x5a0] sm:$0xf0] }
  0x76   : > { %v3686_v54 = vld [vmem:[%s4359_s30 + $0x4dc] sm:$0xf0]  ;;  %v3770_v51 = vld [vmem:[%s4359_s30 + $0x784] sm:$0xf] }
  0x77   : > { %v2928_v55 = vld [vmem:[%s4359_s30 + $0x6c0] sm:$0xf]  ;;  %v2801_v59 = vor.u32 %v3686_v54, %v2800_v53  ;;  %1183 = vmatpush.bf16.msra.mxu1 %v2673_v58  ;;  %v2978_v52 = vld [vmem:[%s4359_s30 + $0x7a0] sm:$0xf0]  ;;  %v2597_v53 = vor.u32 %v3578_v44, %v2594_v45  ;;  %v2725_v54 = vor.u32 %v3642_v46, %v2722_v48 }
  0x78   : > { %v3750_v56 = vld [vmem:[%s4359_s30 + $0x6dc] sm:$0xf0]  ;;  %v2578_v57 = vld [vmem:[%s4359_s30 + $0x160] sm:$0xf0] }
  0x79   : > { %v2528_v60 = vld [vmem:[%s4359_s30 + $0x80] sm:$0xf]  ;;  %v2929_v63 = vor.u32 %v3750_v56, %v2928_v55  ;;  %1196 = vmatpush.bf16.msra.mxu2 %v2801_v59  ;;  %v2853_v55 = vor.u32 %v3706_v49, %v2850_v50  ;;  %v3570_v56 = vld [vmem:[%s4359_s30 + $0x144] sm:$0xf]  ;;  %v2981_v59 = vor.u32 %v3770_v51, %v2978_v52 }
  0x7a   : > { %v3550_v61 = vld [vmem:[%s4359_s30 + $0x9c] sm:$0xf0]  ;;  %v3634_v58 = vld [vmem:[%s4359_s30 + $0x344] sm:$0xf] }
  0x7b   : > { %v2656_v62 = vld [vmem:[%s4359_s30 + $0x280] sm:$0xf]  ;;  %v2529_v5 = vor.u32 %v3550_v61, %v2528_v60  ;;  %1209 = vmatpush.bf16.msra.mxu3 %v2929_v63  ;;  %v2706_v60 = vld [vmem:[%s4359_s30 + $0x360] sm:$0xf0] }
  0x7c   : > { %v3614_v0 = vld [vmem:[%s4359_s30 + $0x29c] sm:$0xf0]  ;;  %v3698_v61 = vld [vmem:[%s4359_s30 + $0x544] sm:$0xf] }
  0x7d   : > { %v2784_v1 = vld [vmem:[%s4359_s30 + $0x480] sm:$0xf]  ;;  %v2657_v6 = vor.u32 %v3614_v0, %v2656_v62  ;;  %1171 = vmatpush.bf16.msra.mxu0 %v2529_v5  ;;  %v2834_v62 = vld [vmem:[%s4359_s30 + $0x560] sm:$0xf0] }
  0x7e   : > { %v3678_v2 = vld [vmem:[%s4359_s30 + $0x49c] sm:$0xf0]  ;;  %v3762_v63 = vld [vmem:[%s4359_s30 + $0x744] sm:$0xf] }
  0x7f   : > { %v2912_v3 = vld [vmem:[%s4359_s30 + $0x680] sm:$0xf]  ;;  %v2785_v7 = vor.u32 %v3678_v2, %v2784_v1  ;;  %1184 = vmatpush.bf16.msra.mxu1 %v2657_v6  ;;  %v2962_v0 = vld [vmem:[%s4359_s30 + $0x760] sm:$0xf0]  ;;  %v2581_v1 = vor.u32 %v3570_v56, %v2578_v57  ;;  %v251_v2 = vld [vmem:[%s197_s20 + $0x8] sm:$0xff] }
  0x80   : > { %v3742_v4 = vld [vmem:[%s4359_s30 + $0x69c] sm:$0xf0]  ;;  %v3562_v5 = vld [vmem:[%s4359_s30 + $0x104] sm:$0xf] }
  0x81   : > { %v2512_v8 = vld [vmem:[%s4359_s30 + $0x40] sm:$0xf]  ;;  %v2913_v11 = vor.u32 %v3742_v4, %v2912_v3  ;;  %1197 = vmatpush.bf16.msra.mxu2 %v2785_v7  ;;  %v2709_v3 = vor.u32 %v3634_v58, %v2706_v60  ;;  %v2837_v4 = vor.u32 %v3698_v61, %v2834_v62  ;;  %v2562_v6 = vld [vmem:[%s4359_s30 + $0x120] sm:$0xf0] }
  0x82   : > { %v3542_v9 = vld [vmem:[%s4359_s30 + $0x5c] sm:$0xf0]  ;;  %v3626_v7 = vld [vmem:[%s4359_s30 + $0x304] sm:$0xf] }
  0x83   : > { %v2640_v10 = vld [vmem:[%s4359_s30 + $0x240] sm:$0xf]  ;;  %v2513_v17 = vor.u32 %v3542_v9, %v2512_v8  ;;  %1210 = vmatpush.bf16.msra.mxu3 %v2913_v11  ;;  %v516_v8 = vunpack.c.l.b16 %v251_v2  ;;  %v517_v9 = vunpack.c.h.b16 %v251_v2  ;;  %v2690_v11 = vld [vmem:[%s4359_s30 + $0x320] sm:$0xf0] }
  0x84   : > { %v3606_v12 = vld [vmem:[%s4359_s30 + $0x25c] sm:$0xf0]  ;;  %v3746_v33 = vld [vmem:[%s4359_s30 + $0x6c4] sm:$0xf] }
  0x85   : > { %v2768_v13 = vld [vmem:[%s4359_s30 + $0x440] sm:$0xf]  ;;  %v2641_v20 = vor.u32 %v3606_v12, %v2640_v10  ;;  %1172 = vmatpush.bf16.msra.mxu0 %v2513_v17  ;;  %v2965_v10 = vor.u32 %v3762_v63, %v2962_v0  ;;  %v3690_v12 = vld [vmem:[%s4359_s30 + $0x504] sm:$0xf]  ;;  %v4471_v17 = vpack.c.b16 %v517_v9, %v517_v9  ;;  %v2744_v9 = vld [vmem:[%s4359_s30 + $0x3c8] sm:$0xf] }
  0x86   : > { %v3670_v14 = vld [vmem:[%s4359_s30 + $0x45c] sm:$0xf0]  ;;  %v2930_v34 = vld [vmem:[%s4359_s30 + $0x6e0] sm:$0xf0] }
  0x87   : > { %v2896_v15 = vld [vmem:[%s4359_s30 + $0x640] sm:$0xf]  ;;  %v2769_v21 = vor.u32 %v3670_v14, %v2768_v13  ;;  %1185 = vmatpush.bf16.msra.mxu1 %v2641_v20  ;;  %v2818_v13 = vld [vmem:[%s4359_s30 + $0x520] sm:$0xf0] }
  0x88   : > { %v3734_v16 = vld [vmem:[%s4359_s30 + $0x65c] sm:$0xf0]  ;;  %v3754_v14 = vld [vmem:[%s4359_s30 + $0x704] sm:$0xf] }
  0x89   : > { %v2496_v18 = vld [vmem:[%s4359_s30] sm:$0xf]  ;;  %v2897_v25 = vor.u32 %v3734_v16, %v2896_v15  ;;  %1198 = vmatpush.bf16.msra.mxu2 %v2769_v21  ;;  %v2946_v15 = vld [vmem:[%s4359_s30 + $0x720] sm:$0xf0]  ;;  %v4469_v16 = vpack.c.b16 %v516_v8, %v516_v8  ;;  %v3591_v8 = vld [vmem:[%s4359_s30 + $0x1e4] sm:$0xf0] }
  0x8a   : > { %v3534_v19 = vld [vmem:[%s4359_s30 + $0x1c] sm:$0xf0]  ;;  %v3546_v38 = vld [vmem:[%s4359_s30 + $0x84] sm:$0xf] }
  0x8b   : > { %v2624_v22 = vld [vmem:[%s4359_s30 + $0x200] sm:$0xf]  ;;  %v2497_v32 = vor.u32 %v3534_v19, %v2496_v18  ;;  %1211 = vmatpush.bf16.msra.mxu3 %v2897_v25  ;;  %v2565_v19 = vor.u32 %v3562_v5, %v2562_v6  ;;  %v2546_v25 = vld [vmem:[%s4359_s30 + $0xe0] sm:$0xf0] }
  0x8c   : > { %v3598_v23 = vld [vmem:[%s4359_s30 + $0x21c] sm:$0xf0]  ;;  %v2530_v39 = vld [vmem:[%s4359_s30 + $0xa0] sm:$0xf0] }
  0x8d   : > { %v2752_v24 = vld [vmem:[%s4359_s30 + $0x400] sm:$0xf]  ;;  %v2625_v36 = vor.u32 %v3598_v23, %v2624_v22  ;;  %1173 = vmatpush.bf16.msra.mxu0 %v2497_v32  ;;  %v2693_v22 = vor.u32 %v3626_v7, %v2690_v11  ;;  %v2821_v23 = vor.u32 %v3690_v12, %v2818_v13  ;;  %v2786_v44 = vld [vmem:[%s4359_s30 + $0x4a0] sm:$0xf0]  ;;  %v2616_v7 = vld [vmem:[%s4359_s30 + $0x1c8] sm:$0xf] }
  0x8e   : > { %v3662_v26 = vld [vmem:[%s4359_s30 + $0x41c] sm:$0xf0]  ;;  %v3738_v45 = vld [vmem:[%s4359_s30 + $0x684] sm:$0xf]  ;;  %v3655_v11 = vld [vmem:[%s4359_s30 + $0x3e4] sm:$0xf0] }
  0x8f   : > { %v2880_v27 = vld [vmem:[%s4359_s30 + $0x600] sm:$0xf]  ;;  %v2753_v37 = vor.u32 %v3662_v26, %v2752_v24  ;;  %1186 = vmatpush.bf16.msra.mxu1 %v2625_v36  ;;  %v3554_v24 = vld [vmem:[%s4359_s30 + $0xc4] sm:$0xf]  ;;  %v2872_v12 = vld [vmem:[%s4359_s30 + $0x5c8] sm:$0xf] }
  0x90   : > { %v3726_v28 = vld [vmem:[%s4359_s30 + $0x61c] sm:$0xf0]  ;;  %v3618_v26 = vld [vmem:[%s4359_s30 + $0x2c4] sm:$0xf]  ;;  %v2549_v35 = vor.u32 %v3554_v24, %v2546_v25  ;;  %v3719_v13 = vld [vmem:[%s4359_s30 + $0x5e4] sm:$0xf0] }
  0x91   : > { %v2881_v40 = vor.u32 %v3726_v28, %v2880_v27  ;;  %1199 = vmatpush.bf16.msra.mxu2 %v2753_v37  ;;  %1218 = vmatpush.bf16.msrb.mxu0 %v2613_v41  ;;  %v250_v18 = vld [vmem:[%s197_s20] sm:$0xff]  ;;  %v2949_v27 = vor.u32 %v3754_v14, %v2946_v15  ;;  %v2805_v37 = vor.u32 %v3682_v29, %v2802_v30  ;;  %v2600_v24 = vld [vmem:[%s4359_s30 + $0x188] sm:$0xf] }
  0x92   : > { %v514_v20 = vunpack.c.l.b16 %v250_v18  ;;  %v515_v21 = vunpack.c.h.b16 %v250_v18  ;;  %v2674_v28 = vld [vmem:[%s4359_s30 + $0x2e0] sm:$0xf0]  ;;  %v2933_v41 = vor.u32 %v3746_v33, %v2930_v34  ;;  %v3000_v18 = vld [vmem:[%s4359_s30 + $0x7c8] sm:$0xf] }
  0x93   : > { %1212 = vmatpush.bf16.msra.mxu3 %v2881_v40  ;;  %1231 = vmatpush.bf16.msrb.mxu1 %v2741_v42  ;;  %v2677_v36 = vor.u32 %v3618_v26, %v2674_v28  ;;  %v3610_v40 = vld [vmem:[%s4359_s30 + $0x284] sm:$0xf]  ;;  %v3583_v25 = vld [vmem:[%s4359_s30 + $0x1a4] sm:$0xf0] }
  0x94   : > { %1200 = vmatmul.bf16.vlgmr.msra.gmra.mxu2 %v4469_v16  ;;  %v4482_v31 = vpack.c.b16 %v514_v20, %v514_v20  ;;  %v4484_v32 = vpack.c.b16 %v515_v21, %v515_v21  ;;  %v2658_v42 = vld [vmem:[%s4359_s30 + $0x2a0] sm:$0xf0]  ;;  %v2617_v21 = vor.u32 %v3591_v8, %v2616_v7  ;;  %v2728_v26 = vld [vmem:[%s4359_s30 + $0x388] sm:$0xf] }
  0x95   : > { %1244 = vmatpush.bf16.msrb.mxu2 %v2869_v43  ;;  %1219 = vmatpush.bf16.msrb.mxu0 %v2597_v53  ;;  %v3674_v43 = vld [vmem:[%s4359_s30 + $0x484] sm:$0xf]  ;;  %v2661_v48 = vor.u32 %v3610_v40, %v2658_v42  ;;  %v3647_v28 = vld [vmem:[%s4359_s30 + $0x3a4] sm:$0xf0] }
  0x96   : > { %1213 = vmatmul.bf16.vlgmr.msra.gmra.mxu3 %v4471_v17  ;;  %1187 = vmatmul.bf16.vlgmr.msra.gmra.mxu1 %v4484_v32  ;;  %v2914_v46 = vld [vmem:[%s4359_s30 + $0x6a0] sm:$0xf0]  ;;  %v2789_v49 = vor.u32 %v3674_v43, %v2786_v44  ;;  %v2856_v29 = vld [vmem:[%s4359_s30 + $0x588] sm:$0xf] }
  0x97   : > { %1257 = vmatpush.bf16.msrb.mxu3 %v2997_v47  ;;  %1232 = vmatpush.bf16.msrb.mxu1 %v2725_v54  ;;  %v2533_v47 = vor.u32 %v3546_v38, %v2530_v39  ;;  %v3538_v50 = vld [vmem:[%s4359_s30 + $0x44] sm:$0xf]  ;;  %v2917_v53 = vor.u32 %v3738_v45, %v2914_v46  ;;  %v3711_v30 = vld [vmem:[%s4359_s30 + $0x5a4] sm:$0xf0] }
  0x98   : > { %1174 = vmatmul.bf16.vlgmr.msra.gmra.mxu0 %v4482_v31  ;;  %v2514_v51 = vld [vmem:[%s4359_s30 + $0x60] sm:$0xf0]  ;;  %v2984_v33 = vld [vmem:[%s4359_s30 + $0x788] sm:$0xf] }
  0x99   : > { %1245 = vmatpush.bf16.msrb.mxu2 %v2853_v55  ;;  %1220 = vmatpush.bf16.msrb.mxu0 %v2581_v1  ;;  %v3602_v52 = vld [vmem:[%s4359_s30 + $0x244] sm:$0xf]  ;;  %v3775_v34 = vld [vmem:[%s4359_s30 + $0x7a4] sm:$0xf0] }
  0x9a   : > { %v2642_v54 = vld [vmem:[%s4359_s30 + $0x260] sm:$0xf0]  ;;  %v2584_v38 = vld [vmem:[%s4359_s30 + $0x148] sm:$0xf] }
  0x9b   : > { %1258 = vmatpush.bf16.msrb.mxu3 %v2981_v59  ;;  %1233 = vmatpush.bf16.msrb.mxu1 %v2709_v3  ;;  %v3666_v55 = vld [vmem:[%s4359_s30 + $0x444] sm:$0xf]  ;;  %v2517_v59 = vor.u32 %v3538_v50, %v2514_v51  ;;  %v2645_v62 = vor.u32 %v3602_v52, %v2642_v54  ;;  %v3575_v39 = vld [vmem:[%s4359_s30 + $0x164] sm:$0xf0] }
  0x9c   : > { %v2770_v56 = vld [vmem:[%s4359_s30 + $0x460] sm:$0xf0]  ;;  %v2712_v40 = vld [vmem:[%s4359_s30 + $0x348] sm:$0xf] }
  0x9d   : > { %1246 = vmatpush.bf16.msrb.mxu2 %v2837_v4  ;;  %1221 = vmatpush.bf16.msrb.mxu0 %v2565_v19  ;;  %v3730_v57 = vld [vmem:[%s4359_s30 + $0x644] sm:$0xf]  ;;  %v2773_v63 = vor.u32 %v3666_v55, %v2770_v56  ;;  %v3783_v19 = vld [vmem:[%s4359_s30 + $0x7e4] sm:$0xf0] }
  0x9e   : > { %v2898_v58 = vld [vmem:[%s4359_s30 + $0x660] sm:$0xf0]  ;;  %v3639_v42 = vld [vmem:[%s4359_s30 + $0x364] sm:$0xf0] }
  0x9f   : > { %1259 = vmatpush.bf16.msrb.mxu3 %v2965_v10  ;;  %1234 = vmatpush.bf16.msrb.mxu1 %v2693_v22  ;;  %v3530_v60 = vld [vmem:[%s4359_s30 + $0x4] sm:$0xf]  ;;  %v2901_v3 = vor.u32 %v3730_v57, %v2898_v58  ;;  %v2745_v22 = vor.u32 %v3655_v11, %v2744_v9  ;;  %v2840_v43 = vld [vmem:[%s4359_s30 + $0x548] sm:$0xf] }
  0xa0   : > { %v2498_v61 = vld [vmem:[%s4359_s30 + $0x20] sm:$0xf0]  ;;  %v3703_v44 = vld [vmem:[%s4359_s30 + $0x564] sm:$0xf0] }
  0xa1   : > { %1247 = vmatpush.bf16.msrb.mxu2 %v2821_v23  ;;  %1222 = vmatpush.bf16.msrb.mxu0 %v2549_v35  ;;  %v3594_v0 = vld [vmem:[%s4359_s30 + $0x204] sm:$0xf]  ;;  %v2501_v10 = vor.u32 %v3530_v60, %v2498_v61  ;;  %v2873_v23 = vor.u32 %v3719_v13, %v2872_v12  ;;  %v2601_v35 = vor.u32 %v3583_v25, %v2600_v24  ;;  %v2968_v45 = vld [vmem:[%s4359_s30 + $0x748] sm:$0xf] }
  0xa2   : > { %v2626_v1 = vld [vmem:[%s4359_s30 + $0x220] sm:$0xf0]  ;;  %v3767_v46 = vld [vmem:[%s4359_s30 + $0x764] sm:$0xf0] }
  0xa3   : > { %1260 = vmatpush.bf16.msrb.mxu3 %v2949_v27  ;;  %1235 = vmatpush.bf16.msrb.mxu1 %v2677_v36  ;;  %v3658_v2 = vld [vmem:[%s4359_s30 + $0x404] sm:$0xf]  ;;  %v2629_v14 = vor.u32 %v3594_v0, %v2626_v1  ;;  %v3001_v27 = vor.u32 %v3783_v19, %v3000_v18  ;;  %v2729_v36 = vor.u32 %v3647_v28, %v2728_v26  ;;  %v2568_v50 = vld [vmem:[%s4359_s30 + $0x108] sm:$0xf] }
  0xa4   : > { %v2754_v4 = vld [vmem:[%s4359_s30 + $0x420] sm:$0xf0]  ;;  %v3567_v51 = vld [vmem:[%s4359_s30 + $0x124] sm:$0xf0] }
  0xa5   : > { %1248 = vmatpush.bf16.msrb.mxu2 %v2805_v37  ;;  %1223 = vmatpush.bf16.msrb.mxu0 %v2533_v47  ;;  %v3722_v5 = vld [vmem:[%s4359_s30 + $0x604] sm:$0xf]  ;;  %v2757_v15 = vor.u32 %v3658_v2, %v2754_v4  ;;  %v2857_v37 = vor.u32 %v3711_v30, %v2856_v29  ;;  %v2585_v47 = vor.u32 %v3575_v39, %v2584_v38  ;;  %v2696_v52 = vld [vmem:[%s4359_s30 + $0x308] sm:$0xf] }
  0xa6   : > { %v2882_v6 = vld [vmem:[%s4359_s30 + $0x620] sm:$0xf0]  ;;  %v3631_v54 = vld [vmem:[%s4359_s30 + $0x324] sm:$0xf0] }
  0xa7   : > { %1261 = vmatpush.bf16.msrb.mxu3 %v2933_v41  ;;  %1236 = vmatpush.bf16.msrb.mxu1 %v2661_v48  ;;  %v2885_v20 = vor.u32 %v3722_v5, %v2882_v6  ;;  %v2985_v41 = vor.u32 %v3775_v34, %v2984_v33  ;;  %v2713_v48 = vor.u32 %v3639_v42, %v2712_v40  ;;  %v2824_v55 = vld [vmem:[%s4359_s30 + $0x508] sm:$0xf] }
  0xa8   : > { %v3695_v56 = vld [vmem:[%s4359_s30 + $0x524] sm:$0xf0]  ;;  %v2697_v60 = vor.u32 %v3631_v54, %v2696_v52  ;;  %v3715_v52 = vld [vmem:[%s4359_s30 + $0x5cc] sm:$0xf] }
  0xa9   : > { %1249 = vmatpush.bf16.msrb.mxu2 %v2789_v49  ;;  %1224 = vmatpush.bf16.msrb.mxu0 %v2517_v59  ;;  %v2841_v49 = vor.u32 %v3703_v44, %v2840_v43  ;;  %v2952_v57 = vld [vmem:[%s4359_s30 + $0x708] sm:$0xf]  ;;  %v2569_v59 = vor.u32 %v3567_v51, %v2568_v50  ;;  %v2825_v61 = vor.u32 %v3695_v56, %v2824_v55  ;;  %v2746_v51 = vld [vmem:[%s4359_s30 + $0x3e8] sm:$0xf0] }
  0xaa   : > { %v3759_v58 = vld [vmem:[%s4359_s30 + $0x724] sm:$0xf0]  ;;  %v3779_v56 = vld [vmem:[%s4359_s30 + $0x7cc] sm:$0xf] }
  0xab   : > { %1262 = vmatpush.bf16.msrb.mxu3 %v2917_v53  ;;  %1237 = vmatpush.bf16.msrb.mxu1 %v2645_v62  ;;  %v2969_v53 = vor.u32 %v3767_v46, %v2968_v45  ;;  %v2552_v62 = vld [vmem:[%s4359_s30 + $0xc8] sm:$0xf]  ;;  %v2953_v1 = vor.u32 %v3759_v58, %v2952_v57  ;;  %v3002_v57 = vld [vmem:[%s4359_s30 + $0x7e8] sm:$0xf0] }
  0xac   : > { %v2680_v0 = vld [vmem:[%s4359_s30 + $0x2c8] sm:$0xf] }
  0xad   : > { %1250 = vmatpush.bf16.msrb.mxu2 %v2773_v63  ;;  %1225 = vmatpush.bf16.msrb.mxu0 %v2501_v10  ;;  %v3559_v63 = vld [vmem:[%s4359_s30 + $0xe4] sm:$0xf0] }
  0xae   : > { %v3623_v2 = vld [vmem:[%s4359_s30 + $0x2e4] sm:$0xf0]  ;;  %v2553_v7 = vor.u32 %v3559_v63, %v2552_v62  ;;  %v3579_v62 = vld [vmem:[%s4359_s30 + $0x18c] sm:$0xf] }
  0xaf   : > { %1263 = vmatpush.bf16.msrb.mxu3 %v2901_v3  ;;  %1238 = vmatpush.bf16.msrb.mxu1 %v2629_v14  ;;  %v2808_v3 = vld [vmem:[%s4359_s30 + $0x4c8] sm:$0xf]  ;;  %v2681_v8 = vor.u32 %v3623_v2, %v2680_v0  ;;  %v2602_v63 = vld [vmem:[%s4359_s30 + $0x1a8] sm:$0xf0] }
  0xb0   : > { %1226 = vmatmul.bf16.vlgmr.msrb.gmra.mxu0 %v4482_v31  ;;  %v3687_v4 = vld [vmem:[%s4359_s30 + $0x4e4] sm:$0xf0]  ;;  %v3643_v0 = vld [vmem:[%s4359_s30 + $0x38c] sm:$0xf] }
  0xb1   : > { %1251 = vmatpush.bf16.msrb.mxu2 %v2757_v15  ;;  %1270 = vmatpush.bf16.msra.mxu0 %v2617_v21  ;;  %v2936_v5 = vld [vmem:[%s4359_s30 + $0x6c8] sm:$0xf]  ;;  %v2809_v9 = vor.u32 %v3687_v4, %v2808_v3  ;;  %v2730_v2 = vld [vmem:[%s4359_s30 + $0x3a8] sm:$0xf0] }
  0xb2   : > { %1239 = vmatmul.bf16.vlgmr.msrb.gmra.mxu1 %v4484_v32  ;;  %v3751_v6 = vld [vmem:[%s4359_s30 + $0x6e4] sm:$0xf0]  ;;  %v3707_v3 = vld [vmem:[%s4359_s30 + $0x58c] sm:$0xf] }
  0xb3   : > { %1264 = vmatpush.bf16.msrb.mxu3 %v2885_v20  ;;  %1283 = vmatpush.bf16.msra.mxu1 %v2745_v22  ;;  %v2536_v10 = vld [vmem:[%s4359_s30 + $0x88] sm:$0xf]  ;;  %v2937_v13 = vor.u32 %v3751_v6, %v2936_v5  ;;  %v2858_v4 = vld [vmem:[%s4359_s30 + $0x5a8] sm:$0xf0] }
  0xb4   : > { %1252 = vmatmul.bf16.vlgmr.msrb.gmra.mxu2 %v4469_v16  ;;  %v3551_v11 = vld [vmem:[%s4359_s30 + $0xa4] sm:$0xf0]  ;;  %v3771_v5 = vld [vmem:[%s4359_s30 + $0x78c] sm:$0xf] }
  0xb5   : > { %1296 = vmatpush.bf16.msra.mxu2 %v2873_v23  ;;  %1271 = vmatpush.bf16.msra.mxu0 %v2601_v35  ;;  %v2664_v12 = vld [vmem:[%s4359_s30 + $0x288] sm:$0xf]  ;;  %v2537_v21 = vor.u32 %v3551_v11, %v2536_v10  ;;  %v2986_v6 = vld [vmem:[%s4359_s30 + $0x7a8] sm:$0xf0] }
  0xb6   : > { %1265 = vmatmul.bf16.vlgmr.msrb.gmra.mxu3 %v4471_v17  ;;  %v3615_v14 = vld [vmem:[%s4359_s30 + $0x2a4] sm:$0xf0]  ;;  %v3571_v10 = vld [vmem:[%s4359_s30 + $0x14c] sm:$0xf] }
  0xb7   : > { %1309 = vmatpush.bf16.msra.mxu3 %v3001_v27  ;;  %1284 = vmatpush.bf16.msra.mxu1 %v2729_v36  ;;  %v2792_v15 = vld [vmem:[%s4359_s30 + $0x488] sm:$0xf]  ;;  %v2665_v22 = vor.u32 %v3615_v14, %v2664_v12  ;;  %v2586_v11 = vld [vmem:[%s4359_s30 + $0x168] sm:$0xf0] }
  0xb8   : > { %v3679_v18 = vld [vmem:[%s4359_s30 + $0x4a4] sm:$0xf0]  ;;  %v3635_v12 = vld [vmem:[%s4359_s30 + $0x34c] sm:$0xf] }
  0xb9   : > { %1297 = vmatpush.bf16.msra.mxu2 %v2857_v37  ;;  %1272 = vmatpush.bf16.msra.mxu0 %v2585_v47  ;;  %v2920_v19 = vld [vmem:[%s4359_s30 + $0x688] sm:$0xf]  ;;  %v2793_v23 = vor.u32 %v3679_v18, %v2792_v15  ;;  %v3587_v47 = vld [vmem:[%s4359_s30 + $0x1cc] sm:$0xf] }
  0xba   : > { %v3743_v20 = vld [vmem:[%s4359_s30 + $0x6a4] sm:$0xf0]  ;;  %v2714_v14 = vld [vmem:[%s4359_s30 + $0x368] sm:$0xf0] }
  0xbb   : > { %1310 = vmatpush.bf16.msra.mxu3 %v2985_v41  ;;  %1285 = vmatpush.bf16.msra.mxu1 %v2713_v48  ;;  %v2520_v24 = vld [vmem:[%s4359_s30 + $0x48] sm:$0xf]  ;;  %v2921_v27 = vor.u32 %v3743_v20, %v2920_v19  ;;  %v2618_v48 = vld [vmem:[%s4359_s30 + $0x1e8] sm:$0xf0] }
  0xbc   : > { %v3543_v25 = vld [vmem:[%s4359_s30 + $0x64] sm:$0xf0]  ;;  %v3699_v15 = vld [vmem:[%s4359_s30 + $0x54c] sm:$0xf] }
  0xbd   : > { %1298 = vmatpush.bf16.msra.mxu2 %v2841_v49  ;;  %1273 = vmatpush.bf16.msra.mxu0 %v2569_v59  ;;  %v2648_v26 = vld [vmem:[%s4359_s30 + $0x248] sm:$0xf]  ;;  %v2521_v35 = vor.u32 %v3543_v25, %v2520_v24  ;;  %v3651_v49 = vld [vmem:[%s4359_s30 + $0x3cc] sm:$0xf]  ;;  %v2621_v59 = vor.u32 %v3587_v47, %v2618_v48 }
  0xbe   : > { %v3607_v28 = vld [vmem:[%s4359_s30 + $0x264] sm:$0xf0]  ;;  %v2842_v18 = vld [vmem:[%s4359_s30 + $0x568] sm:$0xf0] }
  0xbf   : > { %1311 = vmatpush.bf16.msra.mxu3 %v2969_v53  ;;  %1286 = vmatpush.bf16.msra.mxu1 %v2697_v60  ;;  %v2776_v29 = vld [vmem:[%s4359_s30 + $0x448] sm:$0xf]  ;;  %v2649_v38 = vor.u32 %v3607_v28, %v2648_v26  ;;  %v2874_v53 = vld [vmem:[%s4359_s30 + $0x5e8] sm:$0xf0]  ;;  %v2749_v60 = vor.u32 %v3651_v49, %v2746_v51 }
  0xc0   : > { %v3671_v30 = vld [vmem:[%s4359_s30 + $0x464] sm:$0xf0]  ;;  %v3763_v19 = vld [vmem:[%s4359_s30 + $0x74c] sm:$0xf] }
  0xc1   : > { %1299 = vmatpush.bf16.msra.mxu2 %v2825_v61  ;;  %1274 = vmatpush.bf16.msra.mxu0 %v2553_v7  ;;  %v2904_v33 = vld [vmem:[%s4359_s30 + $0x648] sm:$0xf]  ;;  %v2777_v39 = vor.u32 %v3671_v30, %v2776_v29  ;;  %v2877_v61 = vor.u32 %v3715_v52, %v2874_v53  ;;  %v2605_v7 = vor.u32 %v3579_v62, %v2602_v63  ;;  %v2970_v20 = vld [vmem:[%s4359_s30 + $0x768] sm:$0xf0] }
  0xc2   : > { %v3735_v34 = vld [vmem:[%s4359_s30 + $0x664] sm:$0xf0]  ;;  %v3563_v24 = vld [vmem:[%s4359_s30 + $0x10c] sm:$0xf] }
  0xc3   : > { %1312 = vmatpush.bf16.msra.mxu3 %v2953_v1  ;;  %1287 = vmatpush.bf16.msra.mxu1 %v2681_v8  ;;  %v2504_v36 = vld [vmem:[%s4359_s30 + $0x8] sm:$0xf]  ;;  %v2905_v43 = vor.u32 %v3735_v34, %v2904_v33  ;;  %v3005_v1 = vor.u32 %v3779_v56, %v3002_v57  ;;  %v2733_v8 = vor.u32 %v3643_v0, %v2730_v2  ;;  %v2570_v25 = vld [vmem:[%s4359_s30 + $0x128] sm:$0xf0] }
  0xc4   : > { %v3535_v37 = vld [vmem:[%s4359_s30 + $0x24] sm:$0xf0]  ;;  %v3627_v26 = vld [vmem:[%s4359_s30 + $0x30c] sm:$0xf] }
  0xc5   : > { %1300 = vmatpush.bf16.msra.mxu2 %v2809_v9  ;;  %1275 = vmatpush.bf16.msra.mxu0 %v2537_v21  ;;  %v2632_v40 = vld [vmem:[%s4359_s30 + $0x208] sm:$0xf]  ;;  %v2505_v50 = vor.u32 %v3535_v37, %v2504_v36  ;;  %v2861_v9 = vor.u32 %v3707_v3, %v2858_v4  ;;  %v2589_v21 = vor.u32 %v3571_v10, %v2586_v11  ;;  %v2698_v28 = vld [vmem:[%s4359_s30 + $0x328] sm:$0xf0] }
  0xc6   : > { %v3599_v41 = vld [vmem:[%s4359_s30 + $0x224] sm:$0xf0]  ;;  %v3691_v29 = vld [vmem:[%s4359_s30 + $0x50c] sm:$0xf]  ;;  %v2701_v36 = vor.u32 %v3627_v26, %v2698_v28  ;;  %v3376_v26 = vld [vmem:[%s4359_s30 + $0x5d0] sm:$0xf] }
  0xc7   : > { %1313 = vmatpush.bf16.msra.mxu3 %v2937_v13  ;;  %1288 = vmatpush.bf16.msra.mxu1 %v2665_v22  ;;  %v2760_v42 = vld [vmem:[%s4359_s30 + $0x408] sm:$0xf]  ;;  %v2633_v54 = vor.u32 %v3599_v41, %v2632_v40  ;;  %v2989_v13 = vor.u32 %v3771_v5, %v2986_v6  ;;  %v2717_v22 = vor.u32 %v3635_v12, %v2714_v14  ;;  %v2826_v30 = vld [vmem:[%s4359_s30 + $0x528] sm:$0xf0] }
  0xc8   : > { %v3663_v44 = vld [vmem:[%s4359_s30 + $0x424] sm:$0xf0]  ;;  %v3755_v33 = vld [vmem:[%s4359_s30 + $0x70c] sm:$0xf]  ;;  %v2829_v37 = vor.u32 %v3691_v29, %v2826_v30  ;;  %v3504_v30 = vld [vmem:[%s4359_s30 + $0x7d0] sm:$0xf] }
  0xc9   : > { %1301 = vmatpush.bf16.msra.mxu2 %v2793_v23  ;;  %v2888_v45 = vld [vmem:[%s4359_s30 + $0x608] sm:$0xf]  ;;  %1276 = vmatpush.bf16.msra.mxu0 %v2521_v35  ;;  %v2761_v55 = vor.u32 %v3663_v44, %v2760_v42  ;;  %v2845_v23 = vor.u32 %v3699_v15, %v2842_v18  ;;  %v2954_v34 = vld [vmem:[%s4359_s30 + $0x728] sm:$0xf0]  ;;  %v2573_v35 = vor.u32 %v3563_v24, %v2570_v25  ;;  %v3656_v25 = vld [vmem:[%s4359_s30 + $0x3ec] sm:$0xf0] }
  0xca   : > { %v3727_v46 = vld [vmem:[%s4359_s30 + $0x624] sm:$0xf0]  ;;  %v3619_v40 = vld [vmem:[%s4359_s30 + $0x2cc] sm:$0xf]  ;;  %v2957_v41 = vor.u32 %v3755_v33, %v2954_v34  ;;  %v3784_v33 = vld [vmem:[%s4359_s30 + $0x7ec] sm:$0xf0] }
  0xcb   : > { %1314 = vmatpush.bf16.msra.mxu3 %v2921_v27  ;;  %1289 = vmatpush.bf16.msra.mxu1 %v2649_v38  ;;  %v2889_v58 = vor.u32 %v3727_v46, %v2888_v45  ;;  %v2973_v27 = vor.u32 %v3763_v19, %v2970_v20  ;;  %v3555_v38 = vld [vmem:[%s4359_s30 + $0xcc] sm:$0xf] }
  0xcc   : > { %v2682_v42 = vld [vmem:[%s4359_s30 + $0x2e8] sm:$0xf0] }
  0xcd   : > { %1302 = vmatpush.bf16.msra.mxu2 %v2777_v39  ;;  %1277 = vmatpush.bf16.msra.mxu0 %v2505_v50  ;;  %v2554_v39 = vld [vmem:[%s4359_s30 + $0xe8] sm:$0xf0]  ;;  %v2685_v48 = vor.u32 %v3619_v40, %v2682_v42  ;;  %v3232_v40 = vld [vmem:[%s4359_s30 + $0x390] sm:$0xf] }
  0xce   : > { %v2810_v44 = vld [vmem:[%s4359_s30 + $0x4e8] sm:$0xf0]  ;;  %v2557_v47 = vor.u32 %v3555_v38, %v2554_v39  ;;  %v3104_v38 = vld [vmem:[%s4359_s30 + $0x190] sm:$0xf] }
  0xcf   : > { %1315 = vmatpush.bf16.msra.mxu3 %v2905_v43  ;;  %1290 = vmatpush.bf16.msra.mxu1 %v2633_v54  ;;  %v3683_v43 = vld [vmem:[%s4359_s30 + $0x4cc] sm:$0xf]  ;;  %v3584_v39 = vld [vmem:[%s4359_s30 + $0x1ac] sm:$0xf0] }
  0xd0   : > { %1278 = vmatmul.bf16.vlgmr.msra.gmra.mxu0 %v4482_v31  ;;  %v3747_v45 = vld [vmem:[%s4359_s30 + $0x6cc] sm:$0xf]  ;;  %v2813_v49 = vor.u32 %v3683_v43, %v2810_v44  ;;  %v3648_v42 = vld [vmem:[%s4359_s30 + $0x3ac] sm:$0xf0] }
  0xd1   : > { %1303 = vmatpush.bf16.msra.mxu2 %v2761_v55  ;;  %1322 = vmatpush.bf16.msrb.mxu0 %v2621_v59  ;;  %v2938_v46 = vld [vmem:[%s4359_s30 + $0x6e8] sm:$0xf0]  ;;  %v3360_v43 = vld [vmem:[%s4359_s30 + $0x590] sm:$0xf] }
  0xd2   : > { %1291 = vmatmul.bf16.vlgmr.msra.gmra.mxu1 %v4484_v32  ;;  %v3547_v50 = vld [vmem:[%s4359_s30 + $0x8c] sm:$0xf]  ;;  %v2941_v53 = vor.u32 %v3747_v45, %v2938_v46  ;;  %v3712_v44 = vld [vmem:[%s4359_s30 + $0x5ac] sm:$0xf0] }
  0xd3   : > { %1316 = vmatpush.bf16.msra.mxu3 %v2889_v58  ;;  %1335 = vmatpush.bf16.msrb.mxu1 %v2749_v60  ;;  %v2538_v51 = vld [vmem:[%s4359_s30 + $0xa8] sm:$0xf0]  ;;  %v3488_v45 = vld [vmem:[%s4359_s30 + $0x790] sm:$0xf] }
  0xd4   : > { %1304 = vmatmul.bf16.vlgmr.msra.gmra.mxu2 %v4469_v16  ;;  %v3611_v52 = vld [vmem:[%s4359_s30 + $0x28c] sm:$0xf]  ;;  %v2541_v59 = vor.u32 %v3547_v50, %v2538_v51  ;;  %v3776_v46 = vld [vmem:[%s4359_s30 + $0x7ac] sm:$0xf0] }
  0xd5   : > { %1348 = vmatpush.bf16.msrb.mxu2 %v2877_v61  ;;  %1323 = vmatpush.bf16.msrb.mxu0 %v2605_v7  ;;  %v2666_v54 = vld [vmem:[%s4359_s30 + $0x2a8] sm:$0xf0]  ;;  %v3088_v50 = vld [vmem:[%s4359_s30 + $0x150] sm:$0xf] }
  0xd6   : > { %1317 = vmatmul.bf16.vlgmr.msra.gmra.mxu3 %v4471_v17  ;;  %v3675_v55 = vld [vmem:[%s4359_s30 + $0x48c] sm:$0xf]  ;;  %v2669_v60 = vor.u32 %v3611_v52, %v2666_v54  ;;  %v3576_v51 = vld [vmem:[%s4359_s30 + $0x16c] sm:$0xf0] }
  0xd7   : > { %1361 = vmatpush.bf16.msrb.mxu3 %v3005_v1  ;;  %1336 = vmatpush.bf16.msrb.mxu1 %v2733_v8  ;;  %v2794_v56 = vld [vmem:[%s4359_s30 + $0x4a8] sm:$0xf0]  ;;  %v3216_v52 = vld [vmem:[%s4359_s30 + $0x350] sm:$0xf] }
  0xd8   : > { %v3739_v57 = vld [vmem:[%s4359_s30 + $0x68c] sm:$0xf]  ;;  %v2797_v61 = vor.u32 %v3675_v55, %v2794_v56  ;;  %v3640_v54 = vld [vmem:[%s4359_s30 + $0x36c] sm:$0xf0] }
  0xd9   : > { %1349 = vmatpush.bf16.msrb.mxu2 %v2861_v9  ;;  %1324 = vmatpush.bf16.msrb.mxu0 %v2589_v21  ;;  %v2922_v58 = vld [vmem:[%s4359_s30 + $0x6a8] sm:$0xf0]  ;;  %v3120_v21 = vld [vmem:[%s4359_s30 + $0x1d0] sm:$0xf] }
  0xda   : > { %v3539_v62 = vld [vmem:[%s4359_s30 + $0x4c] sm:$0xf]  ;;  %v2925_v1 = vor.u32 %v3739_v57, %v2922_v58  ;;  %v3344_v55 = vld [vmem:[%s4359_s30 + $0x550] sm:$0xf] }
  0xdb   : > { %1362 = vmatpush.bf16.msrb.mxu3 %v2989_v13  ;;  %1337 = vmatpush.bf16.msrb.mxu1 %v2717_v22  ;;  %v2522_v63 = vld [vmem:[%s4359_s30 + $0x68] sm:$0xf0]  ;;  %v3592_v22 = vld [vmem:[%s4359_s30 + $0x1ec] sm:$0xf0] }
  0xdc   : > { %v3603_v0 = vld [vmem:[%s4359_s30 + $0x24c] sm:$0xf]  ;;  %v2525_v7 = vor.u32 %v3539_v62, %v2522_v63  ;;  %v3704_v56 = vld [vmem:[%s4359_s30 + $0x56c] sm:$0xf0] }
  0xdd   : > { %1350 = vmatpush.bf16.msrb.mxu2 %v2845_v23  ;;  %1325 = vmatpush.bf16.msrb.mxu0 %v2573_v35  ;;  %v2650_v2 = vld [vmem:[%s4359_s30 + $0x268] sm:$0xf0]  ;;  %v3248_v23 = vld [vmem:[%s4359_s30 + $0x3d0] sm:$0xf]  ;;  %v3121_v35 = vor.u32 %v3592_v22, %v3120_v21 }
  0xde   : > { %v3667_v3 = vld [vmem:[%s4359_s30 + $0x44c] sm:$0xf]  ;;  %v2653_v10 = vor.u32 %v3603_v0, %v2650_v2  ;;  %v3472_v57 = vld [vmem:[%s4359_s30 + $0x750] sm:$0xf] }
  0xdf   : > { %1363 = vmatpush.bf16.msrb.mxu3 %v2973_v27  ;;  %1338 = vmatpush.bf16.msrb.mxu1 %v2701_v36  ;;  %v2778_v4 = vld [vmem:[%s4359_s30 + $0x468] sm:$0xf0]  ;;  %v3720_v27 = vld [vmem:[%s4359_s30 + $0x5ec] sm:$0xf0]  ;;  %v3249_v36 = vor.u32 %v3656_v25, %v3248_v23 }
  0xe0   : > { %v3731_v5 = vld [vmem:[%s4359_s30 + $0x64c] sm:$0xf]  ;;  %v2781_v11 = vor.u32 %v3667_v3, %v2778_v4  ;;  %v3768_v58 = vld [vmem:[%s4359_s30 + $0x76c] sm:$0xf0] }
  0xe1   : > { %1351 = vmatpush.bf16.msrb.mxu2 %v2829_v37  ;;  %1326 = vmatpush.bf16.msrb.mxu0 %v2557_v47  ;;  %v2906_v6 = vld [vmem:[%s4359_s30 + $0x668] sm:$0xf0]  ;;  %v3377_v37 = vor.u32 %v3720_v27, %v3376_v26  ;;  %v3105_v47 = vor.u32 %v3584_v39, %v3104_v38  ;;  %v3072_v62 = vld [vmem:[%s4359_s30 + $0x110] sm:$0xf] }
  0xe2   : > { %v3531_v8 = vld [vmem:[%s4359_s30 + $0xc] sm:$0xf]  ;;  %v2909_v15 = vor.u32 %v3731_v5, %v2906_v6  ;;  %v3568_v63 = vld [vmem:[%s4359_s30 + $0x12c] sm:$0xf0] }
  0xe3   : > { %1364 = vmatpush.bf16.msrb.mxu3 %v2957_v41  ;;  %1339 = vmatpush.bf16.msrb.mxu1 %v2685_v48  ;;  %v2506_v9 = vld [vmem:[%s4359_s30 + $0x28] sm:$0xf0]  ;;  %v3505_v41 = vor.u32 %v3784_v33, %v3504_v30  ;;  %v3233_v48 = vor.u32 %v3648_v42, %v3232_v40  ;;  %v3200_v0 = vld [vmem:[%s4359_s30 + $0x310] sm:$0xf] }
  0xe4   : > { %v3595_v12 = vld [vmem:[%s4359_s30 + $0x20c] sm:$0xf]  ;;  %v2509_v24 = vor.u32 %v3531_v8, %v2506_v9  ;;  %v3632_v2 = vld [vmem:[%s4359_s30 + $0x32c] sm:$0xf0] }
  0xe5   : > { %1352 = vmatpush.bf16.msrb.mxu2 %v2813_v49  ;;  %1327 = vmatpush.bf16.msrb.mxu0 %v2541_v59  ;;  %v2634_v13 = vld [vmem:[%s4359_s30 + $0x228] sm:$0xf0]  ;;  %v3361_v49 = vor.u32 %v3712_v44, %v3360_v43  ;;  %v3089_v59 = vor.u32 %v3576_v51, %v3088_v50  ;;  %v3328_v3 = vld [vmem:[%s4359_s30 + $0x510] sm:$0xf]  ;;  %v3201_v8 = vor.u32 %v3632_v2, %v3200_v0  ;;  %v3716_v0 = vld [vmem:[%s4359_s30 + $0x5d4] sm:$0xf] }
  0xe6   : > { %v3659_v14 = vld [vmem:[%s4359_s30 + $0x40c] sm:$0xf]  ;;  %v2637_v28 = vor.u32 %v3595_v12, %v2634_v13  ;;  %v3696_v4 = vld [vmem:[%s4359_s30 + $0x52c] sm:$0xf0] }
  0xe7   : > { %1365 = vmatpush.bf16.msrb.mxu3 %v2941_v53  ;;  %1340 = vmatpush.bf16.msrb.mxu1 %v2669_v60  ;;  %v2762_v18 = vld [vmem:[%s4359_s30 + $0x428] sm:$0xf0]  ;;  %v3489_v53 = vor.u32 %v3776_v46, %v3488_v45  ;;  %v3217_v60 = vor.u32 %v3640_v54, %v3216_v52  ;;  %v3456_v5 = vld [vmem:[%s4359_s30 + $0x710] sm:$0xf]  ;;  %v3329_v9 = vor.u32 %v3696_v4, %v3328_v3  ;;  %v3780_v4 = vld [vmem:[%s4359_s30 + $0x7d4] sm:$0xf] }
  0xe8   : > { %v3723_v19 = vld [vmem:[%s4359_s30 + $0x60c] sm:$0xf]  ;;  %v2765_v29 = vor.u32 %v3659_v14, %v2762_v18  ;;  %v3760_v6 = vld [vmem:[%s4359_s30 + $0x72c] sm:$0xf0] }
  0xe9   : > { %1353 = vmatpush.bf16.msrb.mxu2 %v2797_v61  ;;  %v2890_v20 = vld [vmem:[%s4359_s30 + $0x628] sm:$0xf0]  ;;  %1328 = vmatpush.bf16.msrb.mxu0 %v2525_v7  ;;  %v3345_v61 = vor.u32 %v3704_v56, %v3344_v55  ;;  %v3073_v7 = vor.u32 %v3568_v63, %v3072_v62  ;;  %v3184_v12 = vld [vmem:[%s4359_s30 + $0x2d0] sm:$0xf]  ;;  %v3457_v13 = vor.u32 %v3760_v6, %v3456_v5  ;;  %v3250_v63 = vld [vmem:[%s4359_s30 + $0x3f0] sm:$0xf0] }
  0xea   : > { %v2893_v34 = vor.u32 %v3723_v19, %v2890_v20  ;;  %v3624_v14 = vld [vmem:[%s4359_s30 + $0x2ec] sm:$0xf0]  ;;  %v3506_v5 = vld [vmem:[%s4359_s30 + $0x7f0] sm:$0xf0] }
  0xeb   : > { %1366 = vmatpush.bf16.msrb.mxu3 %v2925_v1  ;;  %1341 = vmatpush.bf16.msrb.mxu1 %v2653_v10  ;;  %v3473_v1 = vor.u32 %v3768_v58, %v3472_v57  ;;  %v3056_v10 = vld [vmem:[%s4359_s30 + $0xd0] sm:$0xf]  ;;  %v3185_v22 = vor.u32 %v3624_v14, %v3184_v12  ;;  %v3644_v12 = vld [vmem:[%s4359_s30 + $0x394] sm:$0xf] }
  0xec   : > { %v3688_v18 = vld [vmem:[%s4359_s30 + $0x4ec] sm:$0xf0]  ;;  %v3234_v14 = vld [vmem:[%s4359_s30 + $0x3b0] sm:$0xf0] }
  0xed   : > { %1354 = vmatpush.bf16.msrb.mxu2 %v2781_v11  ;;  %1329 = vmatpush.bf16.msrb.mxu0 %v2509_v24  ;;  %v3560_v11 = vld [vmem:[%s4359_s30 + $0xec] sm:$0xf0] }
  0xee   : > { %v3440_v19 = vld [vmem:[%s4359_s30 + $0x6d0] sm:$0xf]  ;;  %v3057_v21 = vor.u32 %v3560_v11, %v3056_v10  ;;  %v3580_v10 = vld [vmem:[%s4359_s30 + $0x194] sm:$0xf] }
  0xef   : > { %1367 = vmatpush.bf16.msrb.mxu3 %v2909_v15  ;;  %1342 = vmatpush.bf16.msrb.mxu1 %v2637_v28  ;;  %v3312_v15 = vld [vmem:[%s4359_s30 + $0x4d0] sm:$0xf]  ;;  %v3106_v11 = vld [vmem:[%s4359_s30 + $0x1b0] sm:$0xf0] }
  0xf0   : > { %1330 = vmatmul.bf16.vlgmr.msrb.gmra.mxu0 %v4482_v31  ;;  %v3752_v20 = vld [vmem:[%s4359_s30 + $0x6ec] sm:$0xf0]  ;;  %v3313_v23 = vor.u32 %v3688_v18, %v3312_v15  ;;  %v3708_v15 = vld [vmem:[%s4359_s30 + $0x594] sm:$0xf] }
  0xf1   : > { %1355 = vmatpush.bf16.msrb.mxu2 %v2765_v29  ;;  %2026 = vmatpush.bf16.msra.mxu0 %v3121_v35  ;;  %v3040_v24 = vld [vmem:[%s4359_s30 + $0x90] sm:$0xf]  ;;  %v3441_v27 = vor.u32 %v3752_v20, %v3440_v19  ;;  %v3362_v18 = vld [vmem:[%s4359_s30 + $0x5b0] sm:$0xf0] }
  0xf2   : > { %1343 = vmatmul.bf16.vlgmr.msrb.gmra.mxu1 %v4484_v32  ;;  %v3552_v25 = vld [vmem:[%s4359_s30 + $0xac] sm:$0xf0]  ;;  %v3772_v19 = vld [vmem:[%s4359_s30 + $0x794] sm:$0xf] }
  0xf3   : > { %1368 = vmatpush.bf16.msrb.mxu3 %v2893_v34  ;;  %2039 = vmatpush.bf16.msra.mxu1 %v3249_v36  ;;  %v3168_v26 = vld [vmem:[%s4359_s30 + $0x290] sm:$0xf]  ;;  %v3041_v35 = vor.u32 %v3552_v25, %v3040_v24  ;;  %v3490_v20 = vld [vmem:[%s4359_s30 + $0x7b0] sm:$0xf0] }
  0xf4   : > { %1356 = vmatmul.bf16.vlgmr.msrb.gmra.mxu2 %v4469_v16  ;;  %v3616_v28 = vld [vmem:[%s4359_s30 + $0x2ac] sm:$0xf0]  ;;  %v3572_v24 = vld [vmem:[%s4359_s30 + $0x154] sm:$0xf] }
  0xf5   : > { %2052 = vmatpush.bf16.msra.mxu2 %v3377_v37  ;;  %2027 = vmatpush.bf16.msra.mxu0 %v3105_v47  ;;  %v3296_v29 = vld [vmem:[%s4359_s30 + $0x490] sm:$0xf]  ;;  %v3169_v36 = vor.u32 %v3616_v28, %v3168_v26  ;;  %v3090_v25 = vld [vmem:[%s4359_s30 + $0x170] sm:$0xf0] }
  0xf6   : > { %1369 = vmatmul.bf16.vlgmr.msrb.gmra.mxu3 %v4471_v17  ;;  %v3680_v30 = vld [vmem:[%s4359_s30 + $0x4ac] sm:$0xf0]  ;;  %v3636_v26 = vld [vmem:[%s4359_s30 + $0x354] sm:$0xf] }
  0xf7   : > { %2065 = vmatpush.bf16.msra.mxu3 %v3505_v41  ;;  %2040 = vmatpush.bf16.msra.mxu1 %v3233_v48  ;;  %v3424_v33 = vld [vmem:[%s4359_s30 + $0x690] sm:$0xf]  ;;  %v3297_v37 = vor.u32 %v3680_v30, %v3296_v29  ;;  %v3218_v28 = vld [vmem:[%s4359_s30 + $0x370] sm:$0xf0] }
  0xf8   : > { %v3744_v34 = vld [vmem:[%s4359_s30 + $0x6ac] sm:$0xf0]  ;;  %v3700_v29 = vld [vmem:[%s4359_s30 + $0x554] sm:$0xf] }
  0xf9   : > { %2053 = vmatpush.bf16.msra.mxu2 %v3361_v49  ;;  %2028 = vmatpush.bf16.msra.mxu0 %v3089_v59  ;;  %v3024_v38 = vld [vmem:[%s4359_s30 + $0x50] sm:$0xf]  ;;  %v3425_v41 = vor.u32 %v3744_v34, %v3424_v33  ;;  %v3588_v59 = vld [vmem:[%s4359_s30 + $0x1d4] sm:$0xf] }
  0xfa   : > { %v3544_v39 = vld [vmem:[%s4359_s30 + $0x6c] sm:$0xf0]  ;;  %v3346_v30 = vld [vmem:[%s4359_s30 + $0x570] sm:$0xf0] }
  0xfb   : > { %2066 = vmatpush.bf16.msra.mxu3 %v3489_v53  ;;  %2041 = vmatpush.bf16.msra.mxu1 %v3217_v60  ;;  %v3152_v40 = vld [vmem:[%s4359_s30 + $0x250] sm:$0xf]  ;;  %v3025_v47 = vor.u32 %v3544_v39, %v3024_v38  ;;  %v3122_v60 = vld [vmem:[%s4359_s30 + $0x1f0] sm:$0xf0] }
  0xfc   : > { %v3608_v42 = vld [vmem:[%s4359_s30 + $0x26c] sm:$0xf0]  ;;  %v3764_v33 = vld [vmem:[%s4359_s30 + $0x754] sm:$0xf] }
  0xfd   : > { %2054 = vmatpush.bf16.msra.mxu2 %v3345_v61  ;;  %2029 = vmatpush.bf16.msra.mxu0 %v3073_v7  ;;  %v3280_v43 = vld [vmem:[%s4359_s30 + $0x450] sm:$0xf]  ;;  %v3153_v50 = vor.u32 %v3608_v42, %v3152_v40  ;;  %v3652_v61 = vld [vmem:[%s4359_s30 + $0x3d4] sm:$0xf]  ;;  %v3125_v7 = vor.u32 %v3588_v59, %v3122_v60 }
  0xfe   : > { %v3672_v44 = vld [vmem:[%s4359_s30 + $0x46c] sm:$0xf0]  ;;  %v3474_v34 = vld [vmem:[%s4359_s30 + $0x770] sm:$0xf0] }
  0xff   : > { %2067 = vmatpush.bf16.msra.mxu3 %v3473_v1  ;;  %2042 = vmatpush.bf16.msra.mxu1 %v3201_v8  ;;  %v3408_v45 = vld [vmem:[%s4359_s30 + $0x650] sm:$0xf]  ;;  %v3281_v51 = vor.u32 %v3672_v44, %v3280_v43  ;;  %v3378_v1 = vld [vmem:[%s4359_s30 + $0x5f0] sm:$0xf0]  ;;  %v3253_v8 = vor.u32 %v3652_v61, %v3250_v63 }
 0x100   : > { %v3736_v46 = vld [vmem:[%s4359_s30 + $0x66c] sm:$0xf0]  ;;  %v3564_v38 = vld [vmem:[%s4359_s30 + $0x114] sm:$0xf] }
 0x101   : > { %2055 = vmatpush.bf16.msra.mxu2 %v3329_v9  ;;  %2030 = vmatpush.bf16.msra.mxu0 %v3057_v21  ;;  %v3008_v48 = vld [vmem:[%s4359_s30 + $0x10] sm:$0xf]  ;;  %v3409_v55 = vor.u32 %v3736_v46, %v3408_v45  ;;  %v3381_v9 = vor.u32 %v3716_v0, %v3378_v1  ;;  %v3109_v21 = vor.u32 %v3580_v10, %v3106_v11  ;;  %v3074_v39 = vld [vmem:[%s4359_s30 + $0x130] sm:$0xf0] }
 0x102   : > { %v3536_v49 = vld [vmem:[%s4359_s30 + $0x2c] sm:$0xf0]  ;;  %v3628_v40 = vld [vmem:[%s4359_s30 + $0x314] sm:$0xf] }
 0x103   : > { %2068 = vmatpush.bf16.msra.mxu3 %v3457_v13  ;;  %2043 = vmatpush.bf16.msra.mxu1 %v3185_v22  ;;  %v3136_v52 = vld [vmem:[%s4359_s30 + $0x210] sm:$0xf]  ;;  %v3009_v62 = vor.u32 %v3536_v49, %v3008_v48  ;;  %v3509_v13 = vor.u32 %v3780_v4, %v3506_v5  ;;  %v3237_v22 = vor.u32 %v3644_v12, %v3234_v14  ;;  %v3202_v42 = vld [vmem:[%s4359_s30 + $0x330] sm:$0xf0] }
 0x104   : > { %v3600_v53 = vld [vmem:[%s4359_s30 + $0x22c] sm:$0xf0]  ;;  %v3692_v43 = vld [vmem:[%s4359_s30 + $0x514] sm:$0xf]  ;;  %v3205_v48 = vor.u32 %v3628_v40, %v3202_v42  ;;  %v3593_v42 = vld [vmem:[%s4359_s30 + $0x1f4] sm:$0xf0] }
 0x105   : > { %2056 = vmatpush.bf16.msra.mxu2 %v3313_v23  ;;  %2031 = vmatpush.bf16.msra.mxu0 %v3041_v35  ;;  %v3264_v54 = vld [vmem:[%s4359_s30 + $0x410] sm:$0xf]  ;;  %v3137_v2 = vor.u32 %v3600_v53, %v3136_v52  ;;  %v3365_v23 = vor.u32 %v3708_v15, %v3362_v18  ;;  %v3093_v35 = vor.u32 %v3572_v24, %v3090_v25  ;;  %v3330_v44 = vld [vmem:[%s4359_s30 + $0x530] sm:$0xf0] }
 0x106   : > { %v3664_v56 = vld [vmem:[%s4359_s30 + $0x42c] sm:$0xf0]  ;;  %v3756_v45 = vld [vmem:[%s4359_s30 + $0x714] sm:$0xf]  ;;  %v3333_v49 = vor.u32 %v3692_v43, %v3330_v44  ;;  %v3256_v43 = vld [vmem:[%s4359_s30 + $0x3d8] sm:$0xf] }
 0x107   : > { %2069 = vmatpush.bf16.msra.mxu3 %v3441_v27  ;;  %2044 = vmatpush.bf16.msra.mxu1 %v3169_v36  ;;  %v3392_v57 = vld [vmem:[%s4359_s30 + $0x610] sm:$0xf]  ;;  %v3265_v3 = vor.u32 %v3664_v56, %v3264_v54  ;;  %v3493_v27 = vor.u32 %v3772_v19, %v3490_v20  ;;  %v3221_v36 = vor.u32 %v3636_v26, %v3218_v28  ;;  %v3458_v46 = vld [vmem:[%s4359_s30 + $0x730] sm:$0xf0] }
 0x108   : > { %v3728_v58 = vld [vmem:[%s4359_s30 + $0x62c] sm:$0xf0]  ;;  %v3620_v52 = vld [vmem:[%s4359_s30 + $0x2d4] sm:$0xf]  ;;  %v3461_v53 = vor.u32 %v3756_v45, %v3458_v46  ;;  %v3657_v46 = vld [vmem:[%s4359_s30 + $0x3f4] sm:$0xf0] }
 0x109   : > { %2057 = vmatpush.bf16.msra.mxu2 %v3297_v37  ;;  %2032 = vmatpush.bf16.msra.mxu0 %v3025_v47  ;;  %v3393_v6 = vor.u32 %v3728_v58, %v3392_v57  ;;  %v3349_v37 = vor.u32 %v3700_v29, %v3346_v30  ;;  %v3077_v47 = vor.u32 %v3564_v38, %v3074_v39  ;;  %v3186_v54 = vld [vmem:[%s4359_s30 + $0x2f0] sm:$0xf0]  ;;  %v3128_v39 = vld [vmem:[%s4359_s30 + $0x1d8] sm:$0xf] }
 0x10a   : > { %v3314_v56 = vld [vmem:[%s4359_s30 + $0x4f0] sm:$0xf0]  ;;  %v3189_v60 = vor.u32 %v3620_v52, %v3186_v54  ;;  %v3512_v52 = vld [vmem:[%s4359_s30 + $0x7d8] sm:$0xf] }
 0x10b   : > { %2070 = vmatpush.bf16.msra.mxu3 %v3425_v41  ;;  %2045 = vmatpush.bf16.msra.mxu1 %v3153_v50  ;;  %v3477_v41 = vor.u32 %v3764_v33, %v3474_v34  ;;  %v3556_v50 = vld [vmem:[%s4359_s30 + $0xd4] sm:$0xf] }
 0x10c   : > { %v3748_v57 = vld [vmem:[%s4359_s30 + $0x6d4] sm:$0xf] }
 0x10d   : > { %2058 = vmatpush.bf16.msra.mxu2 %v3281_v51  ;;  %2033 = vmatpush.bf16.msra.mxu0 %v3009_v62  ;;  %v3058_v51 = vld [vmem:[%s4359_s30 + $0xf0] sm:$0xf0] }
 0x10e   : > { %v3442_v58 = vld [vmem:[%s4359_s30 + $0x6f0] sm:$0xf0]  ;;  %v3061_v59 = vor.u32 %v3556_v50, %v3058_v51 }
 0x10f   : > { %2071 = vmatpush.bf16.msra.mxu3 %v3409_v55  ;;  %2046 = vmatpush.bf16.msra.mxu1 %v3137_v2  ;;  %v3684_v55 = vld [vmem:[%s4359_s30 + $0x4d4] sm:$0xf]  ;;  %v3445_v1 = vor.u32 %v3748_v57, %v3442_v58  ;;  %v3112_v57 = vld [vmem:[%s4359_s30 + $0x198] sm:$0xf] }
 0x110   : > { %2034 = vmatmul.bf16.vlgmr.msra.gmra.mxu0 %v4482_v31  ;;  %v3317_v61 = vor.u32 %v3684_v55, %v3314_v56  ;;  %v3548_v62 = vld [vmem:[%s4359_s30 + $0x94] sm:$0xf]  ;;  %v3129_v56 = vor.u32 %v3593_v42, %v3128_v39  ;;  %v3192_v42 = vld [vmem:[%s4359_s30 + $0x2d8] sm:$0xf] }
 0x111   : > { %2059 = vmatpush.bf16.msra.mxu2 %v3265_v3  ;;  %2078 = vmatpush.bf16.msrb.mxu0 %v3125_v7  ;;  %v3042_v63 = vld [vmem:[%s4359_s30 + $0xb0] sm:$0xf0] }
 0x112   : > { %2047 = vmatmul.bf16.vlgmr.msra.gmra.mxu1 %v4484_v32  ;;  %v3612_v0 = vld [vmem:[%s4359_s30 + $0x294] sm:$0xf]  ;;  %v3045_v7 = vor.u32 %v3548_v62, %v3042_v63  ;;  %v3240_v62 = vld [vmem:[%s4359_s30 + $0x398] sm:$0xf] }
 0x113   : > { %2072 = vmatpush.bf16.msra.mxu3 %v3393_v6  ;;  %2091 = vmatpush.bf16.msrb.mxu1 %v3253_v8  ;;  %v3170_v2 = vld [vmem:[%s4359_s30 + $0x2b0] sm:$0xf0]  ;;  %v3649_v63 = vld [vmem:[%s4359_s30 + $0x3b4] sm:$0xf0] }
 0x114   : > { %2060 = vmatmul.bf16.vlgmr.msra.gmra.mxu2 %v4469_v16  ;;  %v3676_v3 = vld [vmem:[%s4359_s30 + $0x494] sm:$0xf]  ;;  %v3173_v8 = vor.u32 %v3612_v0, %v3170_v2  ;;  %v3368_v2 = vld [vmem:[%s4359_s30 + $0x598] sm:$0xf] }
 0x115   : > { %2104 = vmatpush.bf16.msrb.mxu2 %v3381_v9  ;;  %2079 = vmatpush.bf16.msrb.mxu0 %v3109_v21  ;;  %v3298_v4 = vld [vmem:[%s4359_s30 + $0x4b0] sm:$0xf0] }
 0x116   : > { %2073 = vmatmul.bf16.vlgmr.msra.gmra.mxu3 %v4471_v17  ;;  %v3740_v5 = vld [vmem:[%s4359_s30 + $0x694] sm:$0xf]  ;;  %v3301_v9 = vor.u32 %v3676_v3, %v3298_v4  ;;  %v3713_v3 = vld [vmem:[%s4359_s30 + $0x5b4] sm:$0xf0] }
 0x117   : > { %2117 = vmatpush.bf16.msrb.mxu3 %v3509_v13  ;;  %2092 = vmatpush.bf16.msrb.mxu1 %v3237_v22  ;;  %v3426_v6 = vld [vmem:[%s4359_s30 + $0x6b0] sm:$0xf0]  ;;  %v1188_v13 = vpop.f32.mrf.mxu1  ;;  %v1175_v22 = vpop.f32.mrf.mxu0  ;;  %v3496_v4 = vld [vmem:[%s4359_s30 + $0x798] sm:$0xf] }
 0x118   : > { %v3540_v10 = vld [vmem:[%s4359_s30 + $0x54] sm:$0xf]  ;;  %v3429_v14 = vor.u32 %v3740_v5, %v3426_v6  ;;  %v3777_v5 = vld [vmem:[%s4359_s30 + $0x7b4] sm:$0xf0] }
 0x119   : > { %2105 = vmatpush.bf16.msrb.mxu2 %v3365_v23  ;;  %2080 = vmatpush.bf16.msrb.mxu0 %v3093_v35  ;;  %v3026_v11 = vld [vmem:[%s4359_s30 + $0x70] sm:$0xf0]  ;;  %v1201_v35 = vpop.f32.mrf.mxu2 }
 0x11a   : > { %v3604_v12 = vld [vmem:[%s4359_s30 + $0x254] sm:$0xf]  ;;  %v3029_v23 = vor.u32 %v3540_v10, %v3026_v11  ;;  %v3369_v10 = vor.u32 %v3713_v3, %v3368_v2  ;;  %v3096_v11 = vld [vmem:[%s4359_s30 + $0x158] sm:$0xf]  ;;  %v509_v2 = vld [vmem:[#allocation2] sm:$0xff] }
 0x11b   : > { %2118 = vmatpush.bf16.msrb.mxu3 %v3493_v27  ;;  %2093 = vmatpush.bf16.msrb.mxu1 %v3221_v36  ;;  %v3154_v15 = vld [vmem:[%s4359_s30 + $0x270] sm:$0xf0]  ;;  %v1189_v27 = vadd.f32 %v1188_v13, %v1175_v22  ;;  %v3224_v13 = vld [vmem:[%s4359_s30 + $0x358] sm:$0xf] }
 0x11c   : > { %v3668_v18 = vld [vmem:[%s4359_s30 + $0x454] sm:$0xf]  ;;  %v3157_v28 = vor.u32 %v3604_v12, %v3154_v15  ;;  %v3577_v12 = vld [vmem:[%s4359_s30 + $0x174] sm:$0xf0] }
 0x11d   : > { %2106 = vmatpush.bf16.msrb.mxu2 %v3349_v37  ;;  %2081 = vmatpush.bf16.msrb.mxu0 %v3077_v47  ;;  %v3282_v19 = vld [vmem:[%s4359_s30 + $0x470] sm:$0xf0]  ;;  %v1202_v40 = vadd.f32 %v1201_v35, %v1189_v27  ;;  %v3384_v47 = vld [vmem:[%s4359_s30 + $0x5d8] sm:$0xf]  ;;  %v3097_v22 = vor.u32 %v3577_v12, %v3096_v11 }
 0x11e   : > { %v3732_v20 = vld [vmem:[%s4359_s30 + $0x654] sm:$0xf]  ;;  %v3285_v29 = vor.u32 %v3668_v18, %v3282_v19  ;;  %v3641_v15 = vld [vmem:[%s4359_s30 + $0x374] sm:$0xf0] }
 0x11f   : > { %2119 = vmatpush.bf16.msrb.mxu3 %v3477_v41  ;;  %2094 = vmatpush.bf16.msrb.mxu1 %v3205_v48  ;;  %v3410_v21 = vld [vmem:[%s4359_s30 + $0x670] sm:$0xf0]  ;;  %v1214_v41 = vpop.f32.mrf.mxu3  ;;  %v3721_v48 = vld [vmem:[%s4359_s30 + $0x5f4] sm:$0xf0]  ;;  %v1190_v54 = vpop.f32.mrf.mxu1 }
 0x120   : > { %v3532_v24 = vld [vmem:[%s4359_s30 + $0x14] sm:$0xf]  ;;  %v3413_v36 = vor.u32 %v3732_v20, %v3410_v21  ;;  %v1177_v0 = vpop.f32.mrf.mxu0  ;;  %v3352_v18 = vld [vmem:[%s4359_s30 + $0x558] sm:$0xf] }
 0x121   : > { %2107 = vmatpush.bf16.msrb.mxu2 %v3333_v49  ;;  %2082 = vmatpush.bf16.msrb.mxu0 %v3061_v59  ;;  %v3010_v25 = vld [vmem:[%s4359_s30 + $0x30] sm:$0xf0]  ;;  %v1215_v49 = vadd.f32 %v1214_v41, %v1202_v40  ;;  %v3257_v59 = vor.u32 %v3657_v46, %v3256_v43  ;;  %v1203_v6 = vpop.f32.mrf.mxu2  ;;  %v3705_v19 = vld [vmem:[%s4359_s30 + $0x574] sm:$0xf0] }
 0x122   : > { %v3596_v26 = vld [vmem:[%s4359_s30 + $0x214] sm:$0xf]  ;;  %v3013_v45 = vor.u32 %v3532_v24, %v3010_v25  ;;  %v3480_v20 = vld [vmem:[%s4359_s30 + $0x758] sm:$0xf]  ;;  %v3353_v24 = vor.u32 %v3705_v19, %v3352_v18 }
 0x123   : > { %2120 = vmatpush.bf16.msrb.mxu3 %v3461_v53  ;;  %2095 = vmatpush.bf16.msrb.mxu1 %v3189_v60  ;;  %v3138_v30 = vld [vmem:[%s4359_s30 + $0x230] sm:$0xf0]  ;;  %v3785_v53 = vld [vmem:[%s4359_s30 + $0x7f4] sm:$0xf0]  ;;  %v3385_v60 = vor.u32 %v3721_v48, %v3384_v47 }
 0x124   : > { %v3660_v33 = vld [vmem:[%s4359_s30 + $0x414] sm:$0xf]  ;;  %v3141_v50 = vor.u32 %v3596_v26, %v3138_v30  ;;  %v3769_v21 = vld [vmem:[%s4359_s30 + $0x774] sm:$0xf0] }
 0x125   : > { %2108 = vmatpush.bf16.msrb.mxu2 %v3317_v61  ;;  %2083 = vmatpush.bf16.msrb.mxu0 %v3045_v7  ;;  %v3266_v34 = vld [vmem:[%s4359_s30 + $0x430] sm:$0xf0]  ;;  %v3585_v61 = vld [vmem:[%s4359_s30 + $0x1b4] sm:$0xf0] }
 0x126   : > { %v3724_v37 = vld [vmem:[%s4359_s30 + $0x614] sm:$0xf]  ;;  %v3269_v51 = vor.u32 %v3660_v33, %v3266_v34  ;;  %v3113_v7 = vor.u32 %v3585_v61, %v3112_v57  ;;  %v3080_v25 = vld [vmem:[%s4359_s30 + $0x118] sm:$0xf] }
 0x127   : > { %2121 = vmatpush.bf16.msrb.mxu3 %v3445_v1  ;;  %2096 = vmatpush.bf16.msrb.mxu1 %v3173_v8  ;;  %v3394_v38 = vld [vmem:[%s4359_s30 + $0x630] sm:$0xf0]  ;;  %v3513_v1 = vor.u32 %v3785_v53, %v3512_v52  ;;  %v1216_v8 = vpop.f32.mrf.mxu3  ;;  %v3569_v26 = vld [vmem:[%s4359_s30 + $0x134] sm:$0xf0] }
 0x128   : > { %v508_v44 = vld [vmem:[#allocation2 + $0x10] sm:$0xff]  ;;  %v3397_v55 = vor.u32 %v3724_v37, %v3394_v38  ;;  %v3208_v27 = vld [vmem:[%s4359_s30 + $0x318] sm:$0xf] }
 0x129   : > { %2109 = vmatpush.bf16.msrb.mxu2 %v3301_v9  ;;  %2084 = vmatpush.bf16.msrb.mxu0 %v3029_v23  ;;  %v1374_v58 = vadd.f32 %v1215_v49, %v508_v44  ;;  %v3241_v9 = vor.u32 %v3649_v63, %v3240_v62  ;;  %v3225_v23 = vor.u32 %v3641_v15, %v3224_v13  ;;  %v3336_v30 = vld [vmem:[%s4359_s30 + $0x518] sm:$0xf] }
 0x12a   : > { %v3697_v33 = vld [vmem:[%s4359_s30 + $0x534] sm:$0xf0] }
 0x12b   : > { %2122 = vmatpush.bf16.msrb.mxu3 %v3429_v14  ;;  %2097 = vmatpush.bf16.msrb.mxu1 %v3157_v28  ;;  %1378 = vst [vmem:[#allocation2 + $0x10] sm:$0xff] %v1374_v58  ;;  %v3497_v14 = vor.u32 %v3777_v5, %v3496_v4  ;;  %v3481_v28 = vor.u32 %v3769_v21, %v3480_v20  ;;  %v3464_v34 = vld [vmem:[%s4359_s30 + $0x718] sm:$0xf] }
 0x12c   : > { %v3761_v35 = vld [vmem:[%s4359_s30 + $0x734] sm:$0xf0]  ;;  %v3337_v39 = vor.u32 %v3697_v33, %v3336_v30 }
 0x12d   : > { %2110 = vmatpush.bf16.msrb.mxu2 %v3285_v29  ;;  %2085 = vmatpush.bf16.msrb.mxu0 %v3013_v45  ;;  %v3633_v29 = vld [vmem:[%s4359_s30 + $0x334] sm:$0xf0]  ;;  %v1227_v37 = vpop.f32.mrf.mxu0  ;;  %v3465_v44 = vor.u32 %v3761_v35, %v3464_v34 }
 0x12e   : > { %v3209_v38 = vor.u32 %v3633_v29, %v3208_v27  ;;  %v3064_v40 = vld [vmem:[%s4359_s30 + $0xd8] sm:$0xf] }
 0x12f   : > { %2123 = vmatpush.bf16.msrb.mxu3 %v3413_v36  ;;  %2098 = vmatpush.bf16.msrb.mxu1 %v3141_v50  ;;  %v3081_v36 = vor.u32 %v3569_v26, %v3080_v25  ;;  %v3561_v41 = vld [vmem:[%s4359_s30 + $0xf4] sm:$0xf0]  ;;  %v1240_v43 = vpop.f32.mrf.mxu1 }
 0x130   : > { %2086 = vmatmul.bf16.vlgmr.msrb.gmra.mxu0 %v4482_v31  ;;  %v3625_v45 = vld [vmem:[%s4359_s30 + $0x2f4] sm:$0xf0]  ;;  %v1241_v48 = vadd.f32 %v1240_v43, %v1227_v37  ;;  %v3589_v37 = vld [vmem:[%s4359_s30 + $0x1dc] sm:$0xf] }
 0x131   : > { %2111 = vmatpush.bf16.msrb.mxu2 %v3269_v51  ;;  %2130 = vmatpush.bf16.msra.mxu0 %v3129_v56  ;;  %v3320_v46 = vld [vmem:[%s4359_s30 + $0x4d8] sm:$0xf]  ;;  %v3065_v51 = vor.u32 %v3561_v41, %v3064_v40  ;;  %v3193_v52 = vor.u32 %v3625_v45, %v3192_v42  ;;  %v3258_v41 = vld [vmem:[%s4359_s30 + $0x3f8] sm:$0xf0] }
 0x132   : > { %2099 = vmatmul.bf16.vlgmr.msrb.gmra.mxu1 %v4484_v32  ;;  %v3689_v47 = vld [vmem:[%s4359_s30 + $0x4f4] sm:$0xf0]  ;;  %v3717_v42 = vld [vmem:[%s4359_s30 + $0x5dc] sm:$0xf] }
 0x133   : > { %2124 = vmatpush.bf16.msrb.mxu3 %v3397_v55  ;;  %2143 = vmatpush.bf16.msra.mxu1 %v3257_v59  ;;  %v3448_v49 = vld [vmem:[%s4359_s30 + $0x6d8] sm:$0xf]  ;;  %v3321_v53 = vor.u32 %v3689_v47, %v3320_v46  ;;  %v3386_v43 = vld [vmem:[%s4359_s30 + $0x5f8] sm:$0xf0] }
 0x134   : > { %2112 = vmatmul.bf16.vlgmr.msrb.gmra.mxu2 %v4469_v16  ;;  %v3753_v50 = vld [vmem:[%s4359_s30 + $0x6f4] sm:$0xf0]  ;;  %v3781_v46 = vld [vmem:[%s4359_s30 + $0x7dc] sm:$0xf] }
 0x135   : > { %2156 = vmatpush.bf16.msra.mxu2 %v3385_v60  ;;  %2131 = vmatpush.bf16.msra.mxu0 %v3113_v7  ;;  %v3048_v54 = vld [vmem:[%s4359_s30 + $0x98] sm:$0xf]  ;;  %v3449_v58 = vor.u32 %v3753_v50, %v3448_v49  ;;  %v1229_v5 = vpop.f32.mrf.mxu0  ;;  %v3514_v47 = vld [vmem:[%s4359_s30 + $0x7f8] sm:$0xf0] }
 0x136   : > { %2125 = vmatmul.bf16.vlgmr.msrb.gmra.mxu3 %v4471_v17  ;;  %v3553_v55 = vld [vmem:[%s4359_s30 + $0xb4] sm:$0xf0]  ;;  %v3701_v5 = vld [vmem:[%s4359_s30 + $0x55c] sm:$0xf] }
 0x137   : > { %2169 = vmatpush.bf16.msra.mxu3 %v3513_v1  ;;  %2144 = vmatpush.bf16.msra.mxu1 %v3241_v9  ;;  %v3176_v56 = vld [vmem:[%s4359_s30 + $0x298] sm:$0xf]  ;;  %v1253_v57 = vpop.f32.mrf.mxu2  ;;  %v3049_v3 = vor.u32 %v3553_v55, %v3048_v54  ;;  %v1242_v11 = vpop.f32.mrf.mxu1  ;;  %v3645_v54 = vld [vmem:[%s4359_s30 + $0x39c] sm:$0xf]  ;;  %v3517_v55 = vor.u32 %v3781_v46, %v3514_v47 }
 0x138   : > { %v3617_v59 = vld [vmem:[%s4359_s30 + $0x2b4] sm:$0xf0]  ;;  %v1254_v62 = vadd.f32 %v1253_v57, %v1241_v48  ;;  %v3709_v57 = vld [vmem:[%s4359_s30 + $0x59c] sm:$0xf] }
 0x139   : > { %2157 = vmatpush.bf16.msra.mxu2 %v3369_v10  ;;  %2132 = vmatpush.bf16.msra.mxu0 %v3097_v22  ;;  %v3304_v60 = vld [vmem:[%s4359_s30 + $0x498] sm:$0xf]  ;;  %v1266_v63 = vpop.f32.mrf.mxu3  ;;  %v3177_v6 = vor.u32 %v3617_v59, %v3176_v56  ;;  %v3242_v56 = vld [vmem:[%s4359_s30 + $0x3b8] sm:$0xf0] }
 0x13a   : > { %v3681_v61 = vld [vmem:[%s4359_s30 + $0x4b4] sm:$0xf0]  ;;  %v1267_v4 = vadd.f32 %v1266_v63, %v1254_v62  ;;  %v3773_v59 = vld [vmem:[%s4359_s30 + $0x79c] sm:$0xf]  ;;  %v3245_v62 = vor.u32 %v3645_v54, %v3242_v56 }
 0x13b   : > { %2170 = vmatpush.bf16.msra.mxu3 %v3497_v14  ;;  %2145 = vmatpush.bf16.msra.mxu1 %v3225_v23  ;;  %v3432_v0 = vld [vmem:[%s4359_s30 + $0x698] sm:$0xf]  ;;  %v3305_v7 = vor.u32 %v3681_v61, %v3304_v60  ;;  %v3498_v60 = vld [vmem:[%s4359_s30 + $0x7b8] sm:$0xf0] }
 0x13c   : > { %v3745_v1 = vld [vmem:[%s4359_s30 + $0x6b4] sm:$0xf0]  ;;  %v1375_v18 = vadd.f32 %v1267_v4, %v509_v2  ;;  %v3637_v2 = vld [vmem:[%s4359_s30 + $0x35c] sm:$0xf] }
 0x13d   : > { %2158 = vmatpush.bf16.msra.mxu2 %v3353_v24  ;;  %2133 = vmatpush.bf16.msra.mxu0 %v3081_v36  ;;  %v3032_v8 = vld [vmem:[%s4359_s30 + $0x58] sm:$0xf]  ;;  %v3433_v12 = vor.u32 %v3745_v1, %v3432_v0  ;;  %v3573_v0 = vld [vmem:[%s4359_s30 + $0x15c] sm:$0xf] }
 0x13e   : > { %v3545_v9 = vld [vmem:[%s4359_s30 + $0x74] sm:$0xf0]  ;;  %1379 = vst [vmem:[#allocation2] sm:$0xff] %v1375_v18  ;;  %v3098_v1 = vld [vmem:[%s4359_s30 + $0x178] sm:$0xf0] }
 0x13f   : > { %2171 = vmatpush.bf16.msra.mxu3 %v3481_v28  ;;  %2146 = vmatpush.bf16.msra.mxu1 %v3209_v38  ;;  %v3160_v10 = vld [vmem:[%s4359_s30 + $0x258] sm:$0xf]  ;;  %v3033_v21 = vor.u32 %v3545_v9, %v3032_v8  ;;  %v1255_v29 = vpop.f32.mrf.mxu2  ;;  %v3130_v38 = vld [vmem:[%s4359_s30 + $0x1f8] sm:$0xf0]  ;;  %v3101_v9 = vor.u32 %v3573_v0, %v3098_v1 }
 0x140   : > { %v3609_v13 = vld [vmem:[%s4359_s30 + $0x274] sm:$0xf0]  ;;  %v3133_v49 = vor.u32 %v3589_v37, %v3130_v38  ;;  %v3226_v4 = vld [vmem:[%s4359_s30 + $0x378] sm:$0xf0] }
 0x141   : > { %2159 = vmatpush.bf16.msra.mxu2 %v3337_v39  ;;  %2134 = vmatpush.bf16.msra.mxu0 %v3065_v51  ;;  %v3288_v14 = vld [vmem:[%s4359_s30 + $0x458] sm:$0xf]  ;;  %v3161_v24 = vor.u32 %v3609_v13, %v3160_v10  ;;  %v1268_v36 = vpop.f32.mrf.mxu3  ;;  %v3653_v39 = vld [vmem:[%s4359_s30 + $0x3dc] sm:$0xf]  ;;  %v3389_v51 = vor.u32 %v3717_v42, %v3386_v43  ;;  %v3229_v10 = vor.u32 %v3637_v2, %v3226_v4 }
 0x142   : > { %v3673_v15 = vld [vmem:[%s4359_s30 + $0x474] sm:$0xf0]  ;;  %v3261_v50 = vor.u32 %v3653_v39, %v3258_v41  ;;  %v3482_v8 = vld [vmem:[%s4359_s30 + $0x778] sm:$0xf0] }
 0x143   : > { %2172 = vmatpush.bf16.msra.mxu3 %v3465_v44  ;;  %2147 = vmatpush.bf16.msra.mxu1 %v3193_v52  ;;  %v3416_v19 = vld [vmem:[%s4359_s30 + $0x658] sm:$0xf]  ;;  %v3289_v25 = vor.u32 %v3673_v15, %v3288_v14  ;;  %v3581_v52 = vld [vmem:[%s4359_s30 + $0x19c] sm:$0xf] }
 0x144   : > { %v3737_v20 = vld [vmem:[%s4359_s30 + $0x674] sm:$0xf0]  ;;  %v3082_v13 = vld [vmem:[%s4359_s30 + $0x138] sm:$0xf0] }
 0x145   : > { %2160 = vmatpush.bf16.msra.mxu2 %v3321_v53  ;;  %2135 = vmatpush.bf16.msra.mxu0 %v3049_v3  ;;  %v3016_v22 = vld [vmem:[%s4359_s30 + $0x18] sm:$0xf]  ;;  %v3417_v30 = vor.u32 %v3737_v20, %v3416_v19  ;;  %v3114_v53 = vld [vmem:[%s4359_s30 + $0x1b8] sm:$0xf0]  ;;  %v3501_v3 = vor.u32 %v3773_v59, %v3498_v60 }
 0x146   : > { %v3537_v23 = vld [vmem:[%s4359_s30 + $0x34] sm:$0xf0]  ;;  %v3117_v61 = vor.u32 %v3581_v52, %v3114_v53  ;;  %v3629_v14 = vld [vmem:[%s4359_s30 + $0x31c] sm:$0xf] }
 0x147   : > { %2173 = vmatpush.bf16.msra.mxu3 %v3449_v58  ;;  %2148 = vmatpush.bf16.msra.mxu1 %v3177_v6  ;;  %v3144_v26 = vld [vmem:[%s4359_s30 + $0x218] sm:$0xf]  ;;  %v3017_v40 = vor.u32 %v3537_v23, %v3016_v22  ;;  %v3370_v58 = vld [vmem:[%s4359_s30 + $0x5b8] sm:$0xf0] }
 0x148   : > { %v3601_v27 = vld [vmem:[%s4359_s30 + $0x234] sm:$0xf0]  ;;  %v3373_v63 = vor.u32 %v3709_v57, %v3370_v58  ;;  %v3354_v6 = vld [vmem:[%s4359_s30 + $0x578] sm:$0xf0] }
 0x149   : > { %2161 = vmatpush.bf16.msra.mxu2 %v3305_v7  ;;  %v3272_v28 = vld [vmem:[%s4359_s30 + $0x418] sm:$0xf]  ;;  %2136 = vmatpush.bf16.msra.mxu0 %v3033_v21  ;;  %v3145_v44 = vor.u32 %v3601_v27, %v3144_v26  ;;  %v3765_v7 = vld [vmem:[%s4359_s30 + $0x75c] sm:$0xf]  ;;  %v3357_v11 = vor.u32 %v3701_v5, %v3354_v6 }
 0x14a   : > { %v3665_v33 = vld [vmem:[%s4359_s30 + $0x434] sm:$0xf0]  ;;  %v3485_v15 = vor.u32 %v3765_v7, %v3482_v8  ;;  %v3210_v18 = vld [vmem:[%s4359_s30 + $0x338] sm:$0xf0] }
 0x14b   : > { %2174 = vmatpush.bf16.msra.mxu3 %v3433_v12  ;;  %v3400_v34 = vld [vmem:[%s4359_s30 + $0x618] sm:$0xf]  ;;  %2149 = vmatpush.bf16.msra.mxu1 %v3161_v24  ;;  %v3273_v45 = vor.u32 %v3665_v33, %v3272_v28  ;;  %v3565_v12 = vld [vmem:[%s4359_s30 + $0x11c] sm:$0xf] }
 0x14c   : > { %v3729_v35 = vld [vmem:[%s4359_s30 + $0x634] sm:$0xf0]  ;;  %v3693_v19 = vld [vmem:[%s4359_s30 + $0x51c] sm:$0xf]  ;;  %v3085_v23 = vor.u32 %v3565_v12, %v3082_v13 }
 0x14d   : > { %2162 = vmatpush.bf16.msra.mxu2 %v3289_v25  ;;  %v3401_v48 = vor.u32 %v3729_v35, %v3400_v34  ;;  %2137 = vmatpush.bf16.msra.mxu0 %v3017_v40  ;;  %v3338_v20 = vld [vmem:[%s4359_s30 + $0x538] sm:$0xf0]  ;;  %v1279_v24 = vpop.f32.mrf.mxu0  ;;  %v3213_v25 = vor.u32 %v3629_v14, %v3210_v18 }
 0x14e   : > { %v3757_v21 = vld [vmem:[%s4359_s30 + $0x71c] sm:$0xf]  ;;  %v3341_v26 = vor.u32 %v3693_v19, %v3338_v20 }
 0x14f   : > { %2175 = vmatpush.bf16.msra.mxu3 %v3417_v30  ;;  %2150 = vmatpush.bf16.msra.mxu1 %v3145_v44  ;;  %v3466_v22 = vld [vmem:[%s4359_s30 + $0x738] sm:$0xf0]  ;;  %v1292_v30 = vpop.f32.mrf.mxu1 }
 0x150   : > { %2138 = vmatmul.bf16.vlgmr.msra.gmra.mxu0 %v4482_v31  ;;  %v3557_v27 = vld [vmem:[%s4359_s30 + $0xdc] sm:$0xf]  ;;  %v3469_v33 = vor.u32 %v3757_v21, %v3466_v22  ;;  %v1293_v37 = vadd.f32 %v1292_v30, %v1279_v24 }
 0x151   : > { %2163 = vmatpush.bf16.msra.mxu2 %v3273_v45  ;;  %2182 = vmatpush.bf16.msrb.mxu0 %v3133_v49  ;;  %v3066_v28 = vld [vmem:[%s4359_s30 + $0xf8] sm:$0xf0] }
 0x152   : > { %2151 = vmatmul.bf16.vlgmr.msra.gmra.mxu1 %v4484_v32  ;;  %v3621_v29 = vld [vmem:[%s4359_s30 + $0x2dc] sm:$0xf]  ;;  %v3069_v40 = vor.u32 %v3557_v27, %v3066_v28 }
 0x153   : > { %2176 = vmatpush.bf16.msra.mxu3 %v3401_v48  ;;  %2195 = vmatpush.bf16.msrb.mxu1 %v3261_v50  ;;  %v3194_v34 = vld [vmem:[%s4359_s30 + $0x2f8] sm:$0xf0] }
 0x154   : > { %2164 = vmatmul.bf16.vlgmr.msra.gmra.mxu2 %v4469_v16  ;;  %v3685_v35 = vld [vmem:[%s4359_s30 + $0x4dc] sm:$0xf]  ;;  %v3197_v41 = vor.u32 %v3621_v29, %v3194_v34 }
 0x155   : > { %2208 = vmatpush.bf16.msrb.mxu2 %v3389_v51  ;;  %2183 = vmatpush.bf16.msrb.mxu0 %v3117_v61  ;;  %v3322_v36 = vld [vmem:[%s4359_s30 + $0x4f8] sm:$0xf0]  ;;  %v1281_v58 = vpop.f32.mrf.mxu0 }
 0x156   : > { %2177 = vmatmul.bf16.vlgmr.msra.gmra.mxu3 %v4471_v17  ;;  %v3749_v38 = vld [vmem:[%s4359_s30 + $0x6dc] sm:$0xf]  ;;  %v3325_v42 = vor.u32 %v3685_v35, %v3322_v36  ;;  %v511_v36 = vld [vmem:[#allocation2 + $0x8] sm:$0xff] }
 0x157   : > { %2221 = vmatpush.bf16.msrb.mxu3 %v3517_v55  ;;  %2196 = vmatpush.bf16.msrb.mxu1 %v3245_v62  ;;  %v3450_v39 = vld [vmem:[%s4359_s30 + $0x6f8] sm:$0xf0]  ;;  %v1305_v46 = vpop.f32.mrf.mxu2  ;;  %v1294_v0 = vpop.f32.mrf.mxu1 }
 0x158   : > { %v3549_v43 = vld [vmem:[%s4359_s30 + $0x9c] sm:$0xf]  ;;  %v3453_v47 = vor.u32 %v3749_v38, %v3450_v39  ;;  %v1306_v51 = vadd.f32 %v1305_v46, %v1293_v37 }
 0x159   : > { %2209 = vmatpush.bf16.msrb.mxu2 %v3373_v63  ;;  %2184 = vmatpush.bf16.msrb.mxu0 %v3101_v9  ;;  %v3050_v44 = vld [vmem:[%s4359_s30 + $0xb8] sm:$0xf0]  ;;  %v1318_v52 = vpop.f32.mrf.mxu3 }
 0x15a   : > { %v3613_v45 = vld [vmem:[%s4359_s30 + $0x29c] sm:$0xf]  ;;  %v3053_v56 = vor.u32 %v3549_v43, %v3050_v44  ;;  %v1319_v57 = vadd.f32 %v1318_v52, %v1306_v51 }
 0x15b   : > { %2222 = vmatpush.bf16.msrb.mxu3 %v3501_v3  ;;  %2197 = vmatpush.bf16.msrb.mxu1 %v3229_v10  ;;  %v3178_v48 = vld [vmem:[%s4359_s30 + $0x2b8] sm:$0xf0] }
 0x15c   : > { %v3677_v49 = vld [vmem:[%s4359_s30 + $0x49c] sm:$0xf]  ;;  %v3181_v59 = vor.u32 %v3613_v45, %v3178_v48  ;;  %v1382_v45 = vld [vmem:[#allocation3] sm:$0xff] }
 0x15d   : > { %2210 = vmatpush.bf16.msrb.mxu2 %v3357_v11  ;;  %2185 = vmatpush.bf16.msrb.mxu0 %v3085_v23  ;;  %v3306_v50 = vld [vmem:[%s4359_s30 + $0x4b8] sm:$0xf0] }
 0x15e   : > { %v3741_v53 = vld [vmem:[%s4359_s30 + $0x69c] sm:$0xf]  ;;  %v3309_v60 = vor.u32 %v3677_v49, %v3306_v50 }
 0x15f   : > { %2223 = vmatpush.bf16.msrb.mxu3 %v3485_v15  ;;  %2198 = vmatpush.bf16.msrb.mxu1 %v3213_v25  ;;  %v3434_v54 = vld [vmem:[%s4359_s30 + $0x6b8] sm:$0xf0]  ;;  %v1307_v14 = vpop.f32.mrf.mxu2 }
 0x160   : > { %v510_v55 = vld [vmem:[#allocation2 + $0x18] sm:$0xff]  ;;  %v3437_v1 = vor.u32 %v3741_v53, %v3434_v54 }
 0x161   : > { %2211 = vmatpush.bf16.msrb.mxu2 %v3341_v26  ;;  %2186 = vmatpush.bf16.msrb.mxu0 %v3069_v40  ;;  %v3541_v61 = vld [vmem:[%s4359_s30 + $0x5c] sm:$0xf]  ;;  %v1376_v5 = vadd.f32 %v1319_v57, %v510_v55  ;;  %v1320_v21 = vpop.f32.mrf.mxu3 }
 0x162   : > { %v3034_v62 = vld [vmem:[%s4359_s30 + $0x78] sm:$0xf0] }
 0x163   : > { %2224 = vmatpush.bf16.msrb.mxu3 %v3469_v33  ;;  %2199 = vmatpush.bf16.msrb.mxu1 %v3197_v41  ;;  %v3605_v63 = vld [vmem:[%s4359_s30 + $0x25c] sm:$0xf]  ;;  %v3037_v8 = vor.u32 %v3541_v61, %v3034_v62  ;;  %1380 = vst [vmem:[#allocation2 + $0x18] sm:$0xff] %v1376_v5 }
 0x164   : > { %v3162_v2 = vld [vmem:[%s4359_s30 + $0x278] sm:$0xf0] }
 0x165   : > { %2212 = vmatpush.bf16.msrb.mxu2 %v3325_v42  ;;  %v3669_v3 = vld [vmem:[%s4359_s30 + $0x45c] sm:$0xf]  ;;  %2187 = vmatpush.bf16.msrb.mxu0 %v3053_v56  ;;  %v3165_v9 = vor.u32 %v3605_v63, %v3162_v2 }
 0x166   : > { %v3290_v4 = vld [vmem:[%s4359_s30 + $0x478] sm:$0xf0] }
 0x167   : > { %2225 = vmatpush.bf16.msrb.mxu3 %v3453_v47  ;;  %v3733_v6 = vld [vmem:[%s4359_s30 + $0x65c] sm:$0xf]  ;;  %2200 = vmatpush.bf16.msrb.mxu1 %v3181_v59  ;;  %v3293_v10 = vor.u32 %v3669_v3, %v3290_v4 }
 0x168   : > { %v3418_v7 = vld [vmem:[%s4359_s30 + $0x678] sm:$0xf0] }
 0x169   : > { %2213 = vmatpush.bf16.msrb.mxu2 %v3309_v60  ;;  %v3533_v11 = vld [vmem:[%s4359_s30 + $0x1c] sm:$0xf]  ;;  %v3421_v15 = vor.u32 %v3733_v6, %v3418_v7  ;;  %2188 = vmatpush.bf16.msrb.mxu0 %v3037_v8  ;;  %v1384_v7 = vld [vmem:[#allocation3 + $0x8] sm:$0xff] }
 0x16a   : > { %v3018_v12 = vld [vmem:[%s4359_s30 + $0x38] sm:$0xf0] }
 0x16b   : > { %v3597_v13 = vld [vmem:[%s4359_s30 + $0x21c] sm:$0xf]  ;;  %2226 = vmatpush.bf16.msrb.mxu3 %v3437_v1  ;;  %v3021_v24 = vor.u32 %v3533_v11, %v3018_v12  ;;  %2201 = vmatpush.bf16.msrb.mxu1 %v3165_v9 }
 0x16c   : > { %v3146_v18 = vld [vmem:[%s4359_s30 + $0x238] sm:$0xf0] }
 0x16d   : > { %v3661_v19 = vld [vmem:[%s4359_s30 + $0x41c] sm:$0xf]  ;;  %2214 = vmatpush.bf16.msrb.mxu2 %v3293_v10  ;;  %v3149_v25 = vor.u32 %v3597_v13, %v3146_v18  ;;  %2189 = vmatpush.bf16.msrb.mxu0 %v3021_v24  ;;  %v1331_v28 = vpop.f32.mrf.mxu0 }
 0x16e   : > { %v3274_v20 = vld [vmem:[%s4359_s30 + $0x438] sm:$0xf0] }
 0x16f   : > { %v3725_v22 = vld [vmem:[%s4359_s30 + $0x61c] sm:$0xf]  ;;  %v3277_v26 = vor.u32 %v3661_v19, %v3274_v20  ;;  %2227 = vmatpush.bf16.msrb.mxu3 %v3421_v15  ;;  %2202 = vmatpush.bf16.msrb.mxu1 %v3149_v25  ;;  %v1344_v29 = vpop.f32.mrf.mxu1 }
 0x170   : > { %v3402_v23 = vld [vmem:[%s4359_s30 + $0x638] sm:$0xf0]  ;;  %2190 = vmatmul.bf16.vlgmr.msrb.gmra.mxu0 %v4482_v31  ;;  %v1345_v30 = vadd.f32 %v1344_v29, %v1331_v28 }
 0x171   : > { %v3405_v27 = vor.u32 %v3725_v22, %v3402_v23  ;;  %2215 = vmatpush.bf16.msrb.mxu2 %v3277_v26  ;;  %v1383_v58 = vld [vmem:[#allocation3 + $0x18] sm:$0xff]  ;;  %v1385_v23 = vld [vmem:[#allocation3 + $0x10] sm:$0xff] }
 0x172   : > { %2203 = vmatmul.bf16.vlgmr.msrb.gmra.mxu1 %v4484_v32 }
 0x173   : > { %2228 = vmatpush.bf16.msrb.mxu3 %v3405_v27 }
 0x174   : > { %2216 = vmatmul.bf16.vlgmr.msrb.gmra.mxu2 %v4469_v16 }
 0x175   : > { %v1333_v38 = vpop.f32.mrf.mxu0 }
 0x176   : > { %2229 = vmatmul.bf16.vlgmr.msrb.gmra.mxu3 %v4471_v17 }
 0x177   : > { %v1357_v33 = vpop.f32.mrf.mxu2  ;;  %v1346_v39 = vpop.f32.mrf.mxu1 }
 0x178   : > { %v1358_v34 = vadd.f32 %v1357_v33, %v1345_v30 }
 0x179   : > { %v1370_v35 = vpop.f32.mrf.mxu3 }
 0x17a   : > { %v1371_v37 = vadd.f32 %v1370_v35, %v1358_v34 }
 0x17c   : > { %v1377_v40 = vadd.f32 %v1371_v37, %v511_v36 }
 0x17e   : > { %1381 = vst [vmem:[#allocation2 + $0x8] sm:$0xff] %v1377_v40 }
 0x17f   : > { %v1359_v41 = vpop.f32.mrf.mxu2 }
 0x181   : > { %v1372_v31 = vpop.f32.mrf.mxu3 }
 0x18d   : > { %v2035_v42 = vpop.f32.mrf.mxu0 }
 0x18f   : > { %v2048_v32 = vpop.f32.mrf.mxu1 }
 0x190   : > { %v2049_v43 = vadd.f32 %v2048_v32, %v2035_v42 }
 0x195   : > { %v2037_v47 = vpop.f32.mrf.mxu0 }
 0x197   : > { %v2061_v16 = vpop.f32.mrf.mxu2  ;;  %v2050_v48 = vpop.f32.mrf.mxu1 }
 0x198   : > { %v2062_v44 = vadd.f32 %v2061_v16, %v2049_v43 }
 0x199   : > { %v2074_v17 = vpop.f32.mrf.mxu3 }
 0x19a   : > { %v2075_v46 = vadd.f32 %v2074_v17, %v2062_v44 }
 0x19c   : > { %v2234_v49 = vadd.f32 %v2075_v46, %v1382_v45 }
 0x19e   : > { %2238 = vst [vmem:[#allocation3] sm:$0xff] %v2234_v49 }
 0x19f   : > { %v2063_v50 = vpop.f32.mrf.mxu2 }
 0x1a1   : > { %v2076_v51 = vpop.f32.mrf.mxu3 }
 0x1ad   : > { %v2087_v52 = vpop.f32.mrf.mxu0 }
 0x1af   : > { %v2100_v53 = vpop.f32.mrf.mxu1 }
 0x1b0   : > { %v2101_v54 = vadd.f32 %v2100_v53, %v2087_v52 }
 0x1b5   : > { %v2089_v60 = vpop.f32.mrf.mxu0 }
 0x1b7   : > { %v2113_v55 = vpop.f32.mrf.mxu2  ;;  %v2102_v61 = vpop.f32.mrf.mxu1 }
 0x1b8   : > { %v2114_v56 = vadd.f32 %v2113_v55, %v2101_v54 }
 0x1b9   : > { %v2126_v57 = vpop.f32.mrf.mxu3 }
 0x1ba   : > { %v2127_v59 = vadd.f32 %v2126_v57, %v2114_v56 }
 0x1bc   : > { %v2235_v62 = vadd.f32 %v2127_v59, %v1383_v58 }
 0x1be   : > { %2239 = vst [vmem:[#allocation3 + $0x18] sm:$0xff] %v2235_v62 }
 0x1bf   : > { %v2115_v63 = vpop.f32.mrf.mxu2 }
 0x1c1   : > { %v2128_v0 = vpop.f32.mrf.mxu3 }
 0x1cd   : > { %v2139_v1 = vpop.f32.mrf.mxu0 }
 0x1cf   : > { %v2152_v2 = vpop.f32.mrf.mxu1 }
 0x1d0   : > { %v2153_v3 = vadd.f32 %v2152_v2, %v2139_v1 }
 0x1d5   : > { %v2141_v9 = vpop.f32.mrf.mxu0 }
 0x1d7   : > { %v2165_v4 = vpop.f32.mrf.mxu2  ;;  %v2154_v10 = vpop.f32.mrf.mxu1 }
 0x1d8   : > { %v2166_v5 = vadd.f32 %v2165_v4, %v2153_v3 }
 0x1d9   : > { %v2178_v6 = vpop.f32.mrf.mxu3 }
 0x1da   : > { %v2179_v8 = vadd.f32 %v2178_v6, %v2166_v5 }
 0x1dc   : > { %v2236_v11 = vadd.f32 %v2179_v8, %v1384_v7 }
 0x1de   : > { %2240 = vst [vmem:[#allocation3 + $0x8] sm:$0xff] %v2236_v11 }
 0x1df   : > { %v2167_v12 = vpop.f32.mrf.mxu2 }
 0x1e1   : > { %v2180_v13 = vpop.f32.mrf.mxu3 }
 0x1ed   : > { %v2191_v14 = vpop.f32.mrf.mxu0 }
 0x1ef   : > { %v2204_v15 = vpop.f32.mrf.mxu1 }
 0x1f0   : > { %v2205_v18 = vadd.f32 %v2204_v15, %v2191_v14 }
 0x1f5   : > { %v2193_v22 = vpop.f32.mrf.mxu0 }
 0x1f7   : > { %v2217_v19 = vpop.f32.mrf.mxu2  ;;  %v2206_v24 = vpop.f32.mrf.mxu1 }
 0x1f8   : > { %v2218_v20 = vadd.f32 %v2217_v19, %v2205_v18 }
 0x1f9   : > { %v2230_v21 = vpop.f32.mrf.mxu3 }
 0x1fa   : > { %v2231_v25 = vadd.f32 %v2230_v21, %v2218_v20 }
 0x1fc   : > { %v2237_v26 = vadd.f32 %v2231_v25, %v1385_v23 }
 0x1fd   : > { %2245 = sbr.rel (%p3518_p8) target bundleno = 553 (0x229), region = 44 }
 0x1fe   : > { %2241 = vst [vmem:[#allocation3 + $0x10] sm:$0xff] %v2237_v26 }
 0x1ff   : > { %v2219_v27 = vpop.f32.mrf.mxu2 }
 0x201   : > { %v2232_v28 = vpop.f32.mrf.mxu3 }
 0x202   : > { %v4928_v29 = vld [vmem:[#allocation2 + $0x10] sm:$0xff]  ;;  %v4930_v30 = vld [vmem:[#allocation2] sm:$0xff]  ;;  %v4934_v35 = vld [vmem:[#allocation2 + $0x18] sm:$0xff] }
 0x203   : > { %v3519_v33 = vmul.f32 -1.442695, %v4928_v29  ;;  %v3520_v34 = vmul.f32 -1.442695, %v4930_v30  ;;  %v4936_v36 = vld [vmem:[#allocation2 + $0x8] sm:$0xff]  ;;  %v2330_v14 = vld [vmem:[#allocation3] sm:$0xff] }
 0x204   : > { %v3521_v37 = vmul.f32 -1.442695, %v4934_v35  ;;  %v3522_v38 = vmul.f32 -1.442695, %v4936_v36  ;;  %v2331_v22 = vld [vmem:[#allocation3 + $0x18] sm:$0xff] }
 0x205   : > { %3922 = vpow2.f32 %v3519_v33 }
 0x206   : > { %3924 = vpow2.f32 %v3520_v34 }
 0x207   : > { %3926 = vpow2.f32 %v3521_v37  ;;  %v2332_v37 = vld [vmem:[#allocation3 + $0x8] sm:$0xff] }
 0x208   : > { %3928 = vpow2.f32 %v3522_v38 }
 0x20b   : > { %v3923_v39 = vpop.eup %3922 }
 0x20c   : > { %v3925_v40 = vpop.eup %3924  ;;  %v2262_v41 = vadd.f32 1.0, %v3923_v39 }
 0x20d   : > { %v3927_v31 = vpop.eup %3926  ;;  %v2263_v42 = vadd.f32 1.0, %v3925_v40  ;;  %v2333_v40 = vld [vmem:[#allocation3 + $0x10] sm:$0xff] }
 0x20e   : > { %v3929_v32 = vpop.eup %3928  ;;  %3930 = vrcp.f32 %v2262_v41  ;;  %v2264_v43 = vadd.f32 1.0, %v3927_v31  ;;  %v2275_v44 = vand.u32 2147483647, %v2262_v41  ;;  %v2277_v17 = vand.u32 2147483648, %v2262_v41 }
 0x20f   : > { %3932 = vrcp.f32 %v2263_v42  ;;  %v2265_v16 = vadd.f32 1.0, %v3929_v32  ;;  %v2290_v46 = vand.u32 2147483647, %v2263_v42  ;;  %v2292_v47 = vand.u32 2147483648, %v2263_v42 }
 0x210   : > { %3934 = vrcp.f32 %v2264_v43  ;;  %vm2271_vm0 = vweird.f32 %v2262_v41  ;;  %vm2286_vm1 = vweird.f32 %v2263_v42  ;;  %vm4940_vm3 = vcmp.eq.f32.partialorder %v2275_v44, 8.507059e+37 }
 0x211   : > { %3936 = vrcp.f32 %v2265_v16  ;;  %v2278_v53 = vor.u32 1.1754944e-38, %v2277_v17  ;;  %vm4944_vm5 = vcmp.eq.f32.partialorder %v2290_v46, 8.507059e+37  ;;  %v2293_v57 = vor.u32 1.1754944e-38, %v2292_v47 }
 0x212   : > { %vm2301_vm6 = vweird.f32 %v2264_v43  ;;  %v2305_v61 = vand.u32 2147483647, %v2264_v43  ;;  %v2307_v0 = vand.u32 2147483648, %v2264_v43  ;;  %vm2316_vm8 = vweird.f32 %v2265_v16 }
 0x213   : > { %v2322_v5 = vand.u32 2147483648, %v2265_v16  ;;  %v2320_v8 = vand.u32 2147483647, %v2265_v16 }
 0x214   : > { %v3931_v45 = vpop.eup %3930  ;;  %vm4960_vm12 = vcmp.eq.f32.partialorder %v2305_v61, 8.507059e+37  ;;  %v2308_v18 = vor.u32 1.1754944e-38, %v2307_v0 }
 0x215   : > { %v3933_v48 = vpop.eup %3932  ;;  %v2267_v49 = vmul.f32 %v3931_v45, %v2262_v41  ;;  %vm2272_vm2 = vweird.f32 %v3931_v45  ;;  %v2323_v24 = vor.u32 1.1754944e-38, %v2322_v5  ;;  %vm2321_vm15 = vcmp.eq.f32.partialorder %v2320_v8, 8.507059e+37 }
 0x216   : > { %v2282_v50 = vmul.f32 %v3933_v48, %v2263_v42  ;;  %v3935_v54 = vpop.eup %3934  ;;  %vm2287_vm4 = vweird.f32 %v3933_v48  ;;  %vm4949_vm7 = vmor %vm2271_vm0, %vm2272_vm2 }
 0x217   : > { %v2268_v51 = vsub.f32 1.0, %v2267_v49  ;;  %v3937_v58 = vpop.eup %3936  ;;  %v2297_v60 = vmul.f32 %v3935_v54, %v2264_v43  ;;  %vm4954_vm9 = vmor %vm2286_vm1, %vm2287_vm4  ;;  %vm2302_vm10 = vweird.f32 %v3935_v54 }
 0x218   : > { %v2283_v55 = vsub.f32 1.0, %v2282_v50  ;;  %v2312_v1 = vmul.f32 %v3937_v58, %v2265_v16  ;;  %vm2317_vm11 = vweird.f32 %v3937_v58  ;;  %vm4969_vm13 = vmor %vm2301_vm6, %vm2302_vm10 }
 0x219   : > { %v2269_v59 = vmul.f32 %v3931_v45, %v2268_v51  ;;  %v2298_v4 = vsub.f32 1.0, %v2297_v60  ;;  %vm2318_vm14 = vmor %vm2316_vm8, %vm2317_vm11 }
 0x21a   : > { %v2284_v63 = vmul.f32 %v3933_v48, %v2283_v55  ;;  %v2313_v7 = vsub.f32 1.0, %v2312_v1 }
 0x21b   : > { %v2270_v2 = vadd.f32 %v3931_v45, %v2269_v59  ;;  %v2299_v10 = vmul.f32 %v3935_v54, %v2298_v4 }
 0x21c   : > { %v2285_v6 = vadd.f32 %v3933_v48, %v2284_v63  ;;  %v2314_v19 = vmul.f32 %v3937_v58, %v2313_v7 }
 0x21d   : > { %v2274_v9 = vsel %vm4949_vm7, %v3931_v45, %v2270_v2  ;;  %v2300_v23 = vadd.f32 %v3935_v54, %v2299_v10 }
 0x21e   : > { %v2279_v12 = vsel %vm4940_vm3, %v2278_v53, %v2274_v9  ;;  %v2289_v13 = vsel %vm4954_vm9, %v3933_v48, %v2285_v6  ;;  %v2315_v26 = vadd.f32 %v3937_v58, %v2314_v19 }
 0x21f   : > { %v2294_v20 = vsel %vm4944_vm5, %v2293_v57, %v2289_v13  ;;  %v2326_v21 = vmul.f32 %v2279_v12, %v4928_v29  ;;  %v2304_v28 = vsel %vm4969_vm13, %v3935_v54, %v2300_v23 }
 0x220   : > { %v2327_v25 = vmul.f32 %v2294_v20, %v4930_v30  ;;  %v2309_v29 = vsel %vm4960_vm12, %v2308_v18, %v2304_v28  ;;  %v2319_v34 = vsel %vm2318_vm14, %v3937_v58, %v2315_v26 }
 0x221   : > { %v2334_v27 = vmul.f32 %v2330_v14, %v2326_v21  ;;  %v2324_v38 = vsel %vm2321_vm15, %v2323_v24, %v2319_v34  ;;  %v2328_v39 = vmul.f32 %v2309_v29, %v4934_v35 }
 0x222   : > { %v2335_v33 = vmul.f32 %v2331_v22, %v2327_v25  ;;  %v2329_v30 = vmul.f32 %v2324_v38, %v4936_v36 }
 0x223   : > { %v2336_v31 = vmul.f32 %v2332_v37, %v2328_v39 }
 0x224   : > { %v2338_v41 = vpack.c.bf16 %v2335_v33, %v2334_v27  ;;  %v2337_v42 = vmul.f32 %v2333_v40, %v2329_v30 }
 0x226   : > { %2340 = vst [vmem:[%s4368_s7] sm:$0xff] %v2338_v41  ;;  %v2339_v32 = vpack.c.bf16 %v2337_v42, %v2336_v31 }
 0x228   : > { %2341 = vst [vmem:[%s4368_s7 + $0x8] sm:$0xff] %v2339_v32 }
 0x229 PF: > { %s3786_s18 = sshll.u32 %s4136_s19, 4  ;;  %s2358_s15 = sshll.u32 %s4368_s7, 4  ;;  %s2359_s15 = int_to_ptr.vmem [resolvable:$true] %s2358_s15 }
 0x22a   : > { %s2356_s28 = scalar_lea.hbm %s5058_s2, %s3786_s18  ;;  %s2343_s11 = scalar_lea.sflag [#allocation6], %s231_s26 }
 0x22b   : > { %s2360_s24 = sshll.u32 %s2356_s28, 4  ;;  %s4018_s19 = scalar_lea.hbm %s5058_s2, 32  ;;  %s2361_s24 = int_to_ptr.hbm [resolvable:$true] %s2360_s24 }
 0x22c   : > { %s4012_s3 = sshra.s32 %s2361_s24, 4  ;;  %s4013_s3 = int_to_ptr.hbm [resolvable:$true] %s4012_s3 }
 0x22d   : > { %s4014_s8 = scalar_lea.hbm %s4013_s3, 16  ;;  %p4019_p2 = scmp.lt.s32.totalorder %s4013_s3, %s5058_s2 }
 0x22e   : > { %p4015_p13 = scmp.ne.s32.totalorder %s4013_s3, %s4014_s8  ;;  %p4020_p7 = scmp.lt.s32.totalorder %s4018_s19, %s4014_s8 }
 0x230   : > { %p4016_p0 = pnand %p4015_p13, %p4308_p6  ;;  %p4021_p10 = por %p4020_p7, %p4019_p2 }
 0x232   : > { %p4017_p5 = pneg %p4016_p0 }
 0x234   : > { %p4022_p11 = pnand %p4021_p10, %p4017_p5 }
 0x236   : > { %4025 = shalt.err (!%p4022_p11)
}
 0x237   : > { %3791 = dma.vmem_to_hbm [thread:$0]  (%p4308_p6), %s2359_s15, 256, %s2361_s24, %s2343_s11  }
 0x238 PF: > { %s5099_s20 = sld [smem:[#allocation13_spill]]  ;;  %p3805_p12 = scmp.ge.s32.totalorder %s4148_s22, 2 }
 0x23a   : > { %p3801_p1 = pnand %p3805_p12, %p4313_p9 }
 0x23c   : > { %p3802_p4 = pneg %p3801_p1 }
 0x23e   : > { %s2372_s9 = sand.u32 1, %s5099_s20  }
 0x23f   : > { %s2373_s17 = scalar_lea.sflag [#allocation6], %s2372_s9 }
 0x240   : > { %4091 = dma.done.wait (%p3802_p4), %s2373_s17, 256  }
 0x241   : > { %4093 = vsyncadd (%p3802_p4), %s2373_s17, 4294967040  ;;  %s21_s22 = sadd.s32 1, %s4148_s22   ;;  %s5102_s12 = sld [smem:[#allocation14_spill]] }
 0x242   : > { %p5009_p3 = scmp.ge.s32.totalorder %s21_s22, 6   ;;  %s5103_s11 = sld [smem:[#allocation21_spill]] }
 0x243   : > { %s5104_s26 = sld [smem:[#allocation20_spill]]  ;;  %s5110_s9 = smov %s4100_s10 }
 0x244   : > { %s5105_s23 = sld [smem:[#allocation15_spill]]  ;;  %s5115_s15 = smov %s4124_s16 }
 0x245   : > { %s5106_s17 = sld [smem:[#allocation19_spill]]  ;;  %s5117_s19 = smov %s4144_s21 }
 0x246   : > { %s5107_s18 = sld [smem:[#allocation16_spill]] }
 0x247   : > { %s5108_s20 = sld [smem:[#allocation17_spill]]  ;;  %s5111_s10 = smov %s5102_s12 }
 0x248   : > { %s5109_s7 = sld [smem:[#allocation18_spill]]  ;;  %s5112_s12 = smov %s4112_s13 }
 0x249   : > { %s5113_s13 = smov %s4116_s14  ;;  %s5114_s14 = smov %s5104_s26 }
 0x24a   : > { %s5116_s16 = smov %s5105_s23  ;;  %20 = sbr.rel (!%p5009_p3) target bundleno = 14 (0xe), region = 94 }
 0x24e   : > { %s5118_s21 = smov %s5109_s7 }
 0x24f   :  { %2379 = vsyncpa [#allocation5], 1 }
 0x250   :  { %2381 = vsyncpa [#allocation5 + $0x1], 1 }
 0x251   :  { %2382 = vsyncpa [#allocation8], 1 }
 0x252   :  { %2384 = vsyncpa [#allocation8 + $0x1], 1 }
 0x253   :  { %2385 = vsyncpa [#allocation6], 1 }
 0x254   :  { %2387 = vsyncpa [#allocation6 + $0x1], 1 }

</bundles_post_ra>
